<compile_context>
chip_gen: v7x
topology: tpu7x:2x2x1
jax: 0.10.0
libtpu: 0.0.40
codegen_flags: <defaults>
</compile_context>

<pallas_src>
import functools

import jax
import jax.numpy as jnp
from jax.experimental import pallas as pl
from jax.experimental.pallas import tpu as pltpu


def _round_up(v: int, m: int) -> int:
    return (v + m - 1) // m * m


def _conv_in_lrelu_kernel(p_ref, w_ref, b_ref, o_ref, *, negative_slope, eps):
    """Fused (im2col-matmul conv) + InstanceNorm2d + LeakyReLU.

    p_ref: (N, Ho*Wo, Kp)   im2col patches, K padded to 128 lanes
    w_ref: (Kp, Cp)         conv weights, Cout padded to 128 lanes
    b_ref: (1, Cp)          conv bias
    o_ref: (N, Ho*Wo, Cp)   output (channels-last, lane-dense)
    """
    n, hw, kp = p_ref.shape
    cp = w_ref.shape[1]

    # Conv as a single MXU matmul with f32 accumulation.
    lhs = p_ref[...].reshape(n * hw, kp)                       # free reshape
    y = jnp.dot(lhs, w_ref[...], preferred_element_type=jnp.float32)
    y = y + b_ref[...]                                         # bias broadcast
    y = y.reshape(n, hw, cp)

    # InstanceNorm2d (affine=False, biased variance) over the spatial axis.
    mean = jnp.mean(y, axis=1, keepdims=True)                  # (N, 1, Cp)
    var = jnp.mean(jnp.square(y - mean), axis=1, keepdims=True)
    y = (y - mean) * jax.lax.rsqrt(var + eps)

    # LeakyReLU(0.2).
    o_ref[...] = jnp.where(y >= 0, y, negative_slope * y).astype(o_ref.dtype)


def resblk_forward(x, weight, bias, *, padding=1, negative_slope=0.2, eps=1e-5):
    """ResBlk.forward: Conv2d(stride=1) -> InstanceNorm2d -> LeakyReLU(0.2).

    x:      (N, Cin, H, W)      NCHW, like PyTorch
    weight: (Cout, Cin, KH, KW) PyTorch Conv2d layout
    bias:   (Cout,)
    returns (N, Cout, Ho, Wo)
    """
    n, cin, h, w = x.shape
    cout, cin_w, kh, kw = weight.shape
    assert cin == cin_w
    ho = h + 2 * padding - kh + 1
    wo = w + 2 * padding - kw + 1

    # --- layout-only preprocessing (XLA): NCHW -> NHWC, spatial pad, im2col ---
    x_nhwc = jnp.transpose(x, (0, 2, 3, 1)).astype(jnp.float32)
    x_sp = jnp.pad(x_nhwc, ((0, 0), (padding, padding), (padding, padding), (0, 0)))
    # Tap order (ky, kx, c), c fastest.
    cols = [x_sp[:, ky:ky + ho, kx:kx + wo, :]
            for ky in range(kh) for kx in range(kw)]
    k = kh * kw * cin
    patches = jnp.concatenate(cols, axis=-1).reshape(n, ho * wo, k)

    # Weight (Cout,Cin,KH,KW) -> (K, Cout) matching the tap order above.
    w_mat = jnp.transpose(weight, (2, 3, 1, 0)).reshape(k, cout).astype(jnp.float32)

    # Lane-dense zero padding: K and Cout up to multiples of 128.
    kp = _round_up(k, 128)
    cp = _round_up(cout, 128)
    patches = jnp.pad(patches, ((0, 0), (0, 0), (0, kp - k)))
    w_mat = jnp.pad(w_mat, ((0, kp - k), (0, cp - cout)))
    b_mat = jnp.pad(bias.astype(jnp.float32), (0, cp - cout)).reshape(1, cp)

    kernel = functools.partial(
        _conv_in_lrelu_kernel, negative_slope=negative_slope, eps=eps)

    # Single-block kernel: everything resident in VMEM, no grid, no per-step
    # pipeline overhead.  (For realistic activation sizes this would grow a
    # grid over N / spatial tiles; unnecessary at a few hundred KiB.)
    out = pl.pallas_call(
        kernel,
        out_shape=jax.ShapeDtypeStruct((n, ho * wo, cp), jnp.float32),
        in_specs=[
            pl.BlockSpec(memory_space=pltpu.MemorySpace.VMEM),
            pl.BlockSpec(memory_space=pltpu.MemorySpace.VMEM),
            pl.BlockSpec(memory_space=pltpu.MemorySpace.VMEM),
        ],
        out_specs=pl.BlockSpec(memory_space=pltpu.MemorySpace.VMEM),
    )(patches, w_mat, b_mat)

    # Drop channel padding, back to NCHW.
    out = out[:, :, :cout].reshape(n, ho, wo, cout)
    return jnp.transpose(out, (0, 3, 1, 2))


if __name__ == "__main__":
    key = jax.random.PRNGKey(0)
    kx, kw_, kb = jax.random.split(key, 3)

    n, cin, h, w = 2, 4, 16, 16
    cout, ks, pad = 8, 3, 1

    x = jax.random.normal(kx, (n, cin, h, w), dtype=jnp.float32)
    weight = jax.random.normal(kw_, (cout, cin, ks, ks), dtype=jnp.float32) * 0.1
    bias = jax.random.normal(kb, (cout,), dtype=jnp.float32) * 0.1

    y = resblk_forward(x, weight, bias, padding=pad)
    jax.block_until_ready(y)

    # Pure-JAX reference: XLA conv + instance norm (biased var) + LeakyReLU.
    ref_conv = jax.lax.conv_general_dilated(
        x, weight, window_strides=(1, 1),
        padding=((pad, pad), (pad, pad)),
        dimension_numbers=("NCHW", "OIHW", "NCHW"),
    ) + bias.reshape(1, cout, 1, 1)
    mu = jnp.mean(ref_conv, axis=(2, 3), keepdims=True)
    var = jnp.var(ref_conv, axis=(2, 3), keepdims=True)
    ref = (ref_conv - mu) * jax.lax.rsqrt(var + 1e-5)
    ref = jnp.where(ref >= 0, ref, 0.2 * ref)

    assert y.shape == (n, cout, h, w) and y.dtype == jnp.float32
    assert bool(jnp.allclose(y, ref, atol=1e-4, rtol=1e-4)), \
        "Pallas ResBlk kernel mismatch vs JAX reference"
    print("KERNEL_OK")
</pallas_src>

<mosaic_0001>
module attributes {stable_mosaic.version = 11 : i64} {
  func.func @_conv_in_lrelu_kernel(%arg0: memref<2x256x128xf32, #tpu.memory_space<vmem>>, %arg1: memref<128x128xf32, #tpu.memory_space<vmem>>, %arg2: memref<1x128xf32, #tpu.memory_space<vmem>>, %arg3: memref<2x256x128xf32, #tpu.memory_space<vmem>>) attributes {dimension_semantics = [], scalar_prefetch = 0 : i64, scratch_operands = 0 : i64, tpu.core_type = #tpu.core_type<tc>} {
    %c0 = arith.constant 0 : index
    %c0_0 = arith.constant 0 : index
    %c0_1 = arith.constant 0 : index
    %0 = vector.load %arg0[%c0, %c0_0, %c0_1] : memref<2x256x128xf32, #tpu.memory_space<vmem>>, vector<2x256x128xf32>
    %1 = vector.shape_cast %0 : vector<2x256x128xf32> to vector<512x128xf32>
    %c0_2 = arith.constant 0 : index
    %c0_3 = arith.constant 0 : index
    %2 = vector.load %arg1[%c0_2, %c0_3] : memref<128x128xf32, #tpu.memory_space<vmem>>, vector<128x128xf32>
    %cst = arith.constant dense<0.000000e+00> : vector<512x128xf32>
    %3 = tpu.matmul %1, %2, %cst {dimension_numbers = #tpu.dot_dimension_numbers<[1], [0], [0], [1], [0, 0, 1, 1], [], []>} : vector<512x128xf32>, vector<128x128xf32>, vector<512x128xf32> -> vector<512x128xf32>
    %c0_4 = arith.constant 0 : index
    %c0_5 = arith.constant 0 : index
    %4 = vector.load %arg2[%c0_4, %c0_5] : memref<1x128xf32, #tpu.memory_space<vmem>>, vector<1x128xf32>
    %5 = vector.broadcast %4 : vector<1x128xf32> to vector<512x128xf32>
    %6 = arith.addf %3, %5 : vector<512x128xf32>
    %7 = vector.shape_cast %6 : vector<512x128xf32> to vector<2x256x128xf32>
    %cst_6 = arith.constant dense<0.000000e+00> : vector<2x128xf32>
    %8 = vector.multi_reduction <add>, %7, %cst_6 [1] : vector<2x256x128xf32> to vector<2x128xf32>
    %9 = vector.shape_cast %8 : vector<2x128xf32> to vector<2x1x128xf32>
    %cst_7 = arith.constant 2.560000e+02 : f32
    %10 = vector.broadcast %cst_7 : f32 to vector<2x1x128xf32>
    %11 = arith.divf %9, %10 : vector<2x1x128xf32>
    %12 = vector.broadcast %11 : vector<2x1x128xf32> to vector<2x256x128xf32>
    %13 = arith.subf %7, %12 : vector<2x256x128xf32>
    %14 = arith.mulf %13, %13 : vector<2x256x128xf32>
    %cst_8 = arith.constant dense<0.000000e+00> : vector<2x128xf32>
    %15 = vector.multi_reduction <add>, %14, %cst_8 [1] : vector<2x256x128xf32> to vector<2x128xf32>
    %16 = vector.shape_cast %15 : vector<2x128xf32> to vector<2x1x128xf32>
    %cst_9 = arith.constant 2.560000e+02 : f32
    %17 = vector.broadcast %cst_9 : f32 to vector<2x1x128xf32>
    %18 = arith.divf %16, %17 : vector<2x1x128xf32>
    %19 = vector.broadcast %11 : vector<2x1x128xf32> to vector<2x256x128xf32>
    %20 = arith.subf %7, %19 : vector<2x256x128xf32>
    %cst_10 = arith.constant 9.99999974E-6 : f32
    %21 = vector.broadcast %cst_10 : f32 to vector<2x1x128xf32>
    %22 = arith.addf %18, %21 : vector<2x1x128xf32>
    %23 = math.rsqrt %22 : vector<2x1x128xf32>
    %24 = vector.broadcast %23 : vector<2x1x128xf32> to vector<2x256x128xf32>
    %25 = arith.mulf %20, %24 : vector<2x256x128xf32>
    %cst_11 = arith.constant 0.000000e+00 : f32
    %26 = vector.broadcast %cst_11 : f32 to vector<2x256x128xf32>
    %27 = arith.cmpf oge, %25, %26 : vector<2x256x128xf32>
    %cst_12 = arith.constant 2.000000e-01 : f32
    %28 = vector.broadcast %cst_12 : f32 to vector<2x256x128xf32>
    %29 = arith.mulf %28, %25 : vector<2x256x128xf32>
    %30 = arith.select %27, %25, %29 : vector<2x256x128xi1>, vector<2x256x128xf32>
    %c0_13 = arith.constant 0 : index
    %c0_14 = arith.constant 0 : index
    %c0_15 = arith.constant 0 : index
    %31 = vector.load %arg3[%c0_13, %c0_14, %c0_15] : memref<2x256x128xf32, #tpu.memory_space<vmem>>, vector<2x256x128xf32>
    tpu.vector_store %arg3[%c0_13, %c0_14, %c0_15], %30 {strides = array<i32>} : memref<2x256x128xf32, #tpu.memory_space<vmem>>, vector<2x256x128xf32>,
    return
  }
}

</mosaic_0001>

<bundles_post_ra>
// kernel: tpu_custom_call.1
= control target key start
LH: loop header
LB: loop body
LE: loop exit
PB: predicated region body
PF: predicated region fallthrough
CT: control target
= control target key end

     0   :  { %8 = vsyncpa [#allocation3], 0  ;;  %s2826_s0 = inlined_call_operand.hbm [shape: f32[2,256,128], index: 0, kind: input, shape index: {}]   ;;  %s2827_s1 = inlined_call_operand.hbm [shape: f32[128,128], index: 1, kind: input, shape index: {}]   ;;  %s2828_s2 = inlined_call_operand.vmem [shape: f32[1,128], index: 2, kind: input, shape index: {}]   ;;  %s2829_s3 = inlined_call_operand.hbm [shape: f32[2,256,128], index: 3, kind: output, shape index: {}]  }
   0x1   :  { %9 = vsyncpa [#allocation6], 0 }
   0x2   :  { %10 = vsyncpa [#allocation4], 0  ;;  %s1476_s12 = smov [#allocation2]   ;;  %s1404_s16 = scalar_lea.hbm %s2826_s0, 8192 }
   0x3   :  { %s16_s13 = sshll.u32 %s1476_s12, 4  ;;  %p1405_p0 = scmp.ne.s32.totalorder %s2826_s0, %s1404_s16  ;;  %s17_s13 = int_to_ptr.vmem [resolvable:$true] %s16_s13 }
   0x4   :  { %p1408_p1 = scmp.lt.u32.totalorder %s1404_s16, %s2826_s0 }
   0x6   :  { %p1410_p2 = pnand %p1408_p1, %p1405_p0 }
   0x8   :  { %1413 = shalt.err (!%p1410_p2)
}
   0x9   :  { %s1414_s21 = scalar_lea.vmem %s17_s13, 8192  ;;  %p1419_p4 = scmp.lt.s32.totalorder %s17_s13, %s17_s13 }
   0xa   :  { %p1415_p3 = scmp.ne.s32.totalorder %s17_s13, %s1414_s21  ;;  %p1420_p5 = scmp.lt.s32.totalorder %s1414_s21, %s1414_s21 }
   0xc   :  { %p1421_p6 = por %p1420_p5, %p1419_p4 }
   0xe   :  { %p1422_p7 = pnand %p1421_p6, %p1415_p3 }
  0x10   :  { %1425 = shalt.err (!%p1422_p7)
}
  0x11   :  { %s1477_s22 = smov 128   ;;  %s1478_s23 = smov 8  }
  0x12   :  { %22 = dma.hbm_to_vmem [thread:$0]  %s2826_s0, 8192, %s17_s13, [#allocation3], %s1477_s22, %s1477_s22, %s1478_s23  }
  0x13   :  { %s1479_s26 = smov [#allocation5]   ;;  %s1426_s30 = scalar_lea.hbm %s2827_s1, 2048 }
  0x14   :  { %s28_s27 = sshll.u32 %s1479_s26, 4  ;;  %p1427_p8 = scmp.ne.s32.totalorder %s2827_s1, %s1426_s30  ;;  %s29_s27 = int_to_ptr.vmem [resolvable:$true] %s28_s27 }
  0x15   :  { %p1430_p9 = scmp.lt.u32.totalorder %s1426_s30, %s2827_s1 }
  0x17   :  { %p1432_p10 = pnand %p1430_p9, %p1427_p8 }
  0x19   :  { %1435 = shalt.err (!%p1432_p10)
}
  0x1a   :  { %s1436_s8 = scalar_lea.vmem %s29_s27, 2048  ;;  %p1441_p12 = scmp.lt.s32.totalorder %s29_s27, %s29_s27 }
  0x1b   :  { %p1437_p11 = scmp.ne.s32.totalorder %s29_s27, %s1436_s8  ;;  %p1442_p13 = scmp.lt.s32.totalorder %s1436_s8, %s1436_s8 }
  0x1d   :  { %p1443_p0 = por %p1442_p13, %p1441_p12 }
  0x1f   :  { %p1444_p1 = pnand %p1443_p0, %p1437_p11 }
  0x21   :  { %1447 = shalt.err (!%p1444_p1)
}
  0x22   :  { %34 = dma.hbm_to_vmem [thread:$0]  %s2827_s1, 2048, %s29_s27, [#allocation6], %s1477_s22, %s1477_s22, %s1478_s23  }
  0x23   :  { %1470 = dma.done.wait [#allocation3], 8192  }
  0x24   :  { %1471 = vsyncadd [#allocation3], 4294959104 }
  0x25   :  { %1472 = dma.done.wait [#allocation6], 2048  }
  0x26   :  { %1473 = vsyncadd [#allocation6], 4294965248  ;;  %v107_v0 = vld [vmem:[#allocation5] sm:$0xff]  ;;  %v108_v1 = vld [vmem:[#allocation5 + $0x8] sm:$0xff] }
  0x27   :  { %v109_v2 = vld [vmem:[#allocation5 + $0x10] sm:$0xff]  ;;  %v1347_v3 = vpack.c.bf16 %v108_v1, %v107_v0  ;;  %v110_v4 = vld [vmem:[#allocation5 + $0x18] sm:$0xff]  ;;  %v111_v6 = vld [vmem:[#allocation5 + $0x20] sm:$0xff] }
  0x28   :  { %v1351_v5 = vpack.c.bf16 %v110_v4, %v109_v2  ;;  %v112_v7 = vld [vmem:[#allocation5 + $0x28] sm:$0xff]  ;;  %v43_v9 = vld [vmem:[#allocation2] sm:$0xff]  ;;  %v113_v11 = vld [vmem:[#allocation5 + $0x30] sm:$0xff] }
  0x29   :  { %1348 = vmatprep.subr.bf16.mxu0 %v1347_v3  ;;  %1379 = vmatprep.subr.bf16.mxu1 %v1347_v3  ;;  %v1355_v8 = vpack.c.bf16 %v112_v7, %v111_v6  ;;  %v75_v10 = vld [vmem:[#allocation2 + $0x100] sm:$0xff]  ;;  %v114_v12 = vld [vmem:[#allocation5 + $0x38] sm:$0xff]  ;;  %v116_v15 = vld [vmem:[#allocation5 + $0x48] sm:$0xff] }
  0x2a   :  { %1350 = vmatpush3.bf16.msra.mxu0 %v1347_v3  ;;  %1387 = vmatpush3.bf16.msra.mxu1 %v1347_v3  ;;  %v1359_v13 = vpack.c.bf16 %v114_v12, %v113_v11  ;;  %v115_v14 = vld [vmem:[#allocation5 + $0x40] sm:$0xff]  ;;  %v117_v17 = vld [vmem:[#allocation5 + $0x50] sm:$0xff]  ;;  %v118_v18 = vld [vmem:[#allocation5 + $0x58] sm:$0xff] }
  0x2b   :  { %1352 = vmatprep.subr.bf16.mxu0 %v1351_v5  ;;  %1380 = vmatprep.subr.bf16.mxu1 %v1351_v5  ;;  %v1363_v16 = vpack.c.bf16 %v116_v15, %v115_v14  ;;  %v1367_v19 = vpack.c.bf16 %v118_v18, %v117_v17  ;;  %v119_v20 = vld [vmem:[#allocation5 + $0x60] sm:$0xff]  ;;  %v120_v21 = vld [vmem:[#allocation5 + $0x68] sm:$0xff]  ;;  %v121_v23 = vld [vmem:[#allocation5 + $0x70] sm:$0xff] }
  0x2c   :  { %1251 = vmatprep.mubr.f32.mxu0 %v43_v9  ;;  %1299 = vmatprep.mubr.f32.mxu1 %v75_v10  ;;  %v1371_v22 = vpack.c.bf16 %v120_v21, %v119_v20  ;;  %v122_v24 = vld [vmem:[#allocation5 + $0x78] sm:$0xff]  ;;  %v44_v26 = vld [vmem:[#allocation2 + $0x8] sm:$0xff]  ;;  %v45_v28 = vld [vmem:[#allocation2 + $0x10] sm:$0xff] }
  0x2d   :  { %v1375_v25 = vpack.c.bf16 %v122_v24, %v121_v23  ;;  %v76_v27 = vld [vmem:[#allocation2 + $0x108] sm:$0xff]  ;;  %v77_v29 = vld [vmem:[#allocation2 + $0x110] sm:$0xff]  ;;  %v46_v30 = vld [vmem:[#allocation2 + $0x18] sm:$0xff] }
  0x2e   :  { %1354 = vmatpush3.bf16.msra.mxu0 %v1351_v5  ;;  %1388 = vmatpush3.bf16.msra.mxu1 %v1351_v5  ;;  %v78_v31 = vld [vmem:[#allocation2 + $0x118] sm:$0xff]  ;;  %v47_v32 = vld [vmem:[#allocation2 + $0x20] sm:$0xff]  ;;  %v48_v34 = vld [vmem:[#allocation2 + $0x28] sm:$0xff] }
  0x2f   :  { %1356 = vmatprep.subr.bf16.mxu0 %v1355_v8  ;;  %1381 = vmatprep.subr.bf16.mxu1 %v1355_v8  ;;  %v79_v33 = vld [vmem:[#allocation2 + $0x120] sm:$0xff]  ;;  %v80_v35 = vld [vmem:[#allocation2 + $0x128] sm:$0xff]  ;;  %v49_v36 = vld [vmem:[#allocation2 + $0x30] sm:$0xff] }
  0x30   :  { %v81_v37 = vld [vmem:[#allocation2 + $0x130] sm:$0xff]  ;;  %v50_v38 = vld [vmem:[#allocation2 + $0x38] sm:$0xff]  ;;  %v51_v40 = vld [vmem:[#allocation2 + $0x40] sm:$0xff] }
  0x31   :  { %v82_v39 = vld [vmem:[#allocation2 + $0x138] sm:$0xff]  ;;  %v83_v41 = vld [vmem:[#allocation2 + $0x140] sm:$0xff]  ;;  %v52_v42 = vld [vmem:[#allocation2 + $0x48] sm:$0xff] }
  0x32   :  { %1358 = vmatpush3.bf16.msra.mxu0 %v1355_v8  ;;  %1389 = vmatpush3.bf16.msra.mxu1 %v1355_v8  ;;  %v84_v43 = vld [vmem:[#allocation2 + $0x148] sm:$0xff]  ;;  %v53_v44 = vld [vmem:[#allocation2 + $0x50] sm:$0xff]  ;;  %v54_v46 = vld [vmem:[#allocation2 + $0x58] sm:$0xff] }
  0x33   :  { %1360 = vmatprep.subr.bf16.mxu0 %v1359_v13  ;;  %1382 = vmatprep.subr.bf16.mxu1 %v1359_v13  ;;  %v85_v45 = vld [vmem:[#allocation2 + $0x150] sm:$0xff]  ;;  %v86_v47 = vld [vmem:[#allocation2 + $0x158] sm:$0xff]  ;;  %v55_v48 = vld [vmem:[#allocation2 + $0x60] sm:$0xff] }
  0x34   :  { %v87_v49 = vld [vmem:[#allocation2 + $0x160] sm:$0xff]  ;;  %v56_v50 = vld [vmem:[#allocation2 + $0x68] sm:$0xff]  ;;  %v57_v52 = vld [vmem:[#allocation2 + $0x70] sm:$0xff] }
  0x35   :  { %v88_v51 = vld [vmem:[#allocation2 + $0x168] sm:$0xff]  ;;  %v89_v53 = vld [vmem:[#allocation2 + $0x170] sm:$0xff]  ;;  %v58_v54 = vld [vmem:[#allocation2 + $0x78] sm:$0xff] }
  0x36   :  { %1362 = vmatpush3.bf16.msra.mxu0 %v1359_v13  ;;  %1390 = vmatpush3.bf16.msra.mxu1 %v1359_v13  ;;  %v90_v55 = vld [vmem:[#allocation2 + $0x178] sm:$0xff]  ;;  %v59_v56 = vld [vmem:[#allocation2 + $0x80] sm:$0xff]  ;;  %v60_v58 = vld [vmem:[#allocation2 + $0x88] sm:$0xff] }
  0x37   :  { %1364 = vmatprep.subr.bf16.mxu0 %v1363_v16  ;;  %1383 = vmatprep.subr.bf16.mxu1 %v1363_v16  ;;  %v91_v57 = vld [vmem:[#allocation2 + $0x180] sm:$0xff]  ;;  %v92_v59 = vld [vmem:[#allocation2 + $0x188] sm:$0xff]  ;;  %v61_v60 = vld [vmem:[#allocation2 + $0x90] sm:$0xff] }
  0x38   :  { %v93_v61 = vld [vmem:[#allocation2 + $0x190] sm:$0xff]  ;;  %v62_v62 = vld [vmem:[#allocation2 + $0x98] sm:$0xff]  ;;  %v63_v0 = vld [vmem:[#allocation2 + $0xa0] sm:$0xff] }
  0x39   :  { %v94_v63 = vld [vmem:[#allocation2 + $0x198] sm:$0xff]  ;;  %v95_v1 = vld [vmem:[#allocation2 + $0x1a0] sm:$0xff]  ;;  %v64_v2 = vld [vmem:[#allocation2 + $0xa8] sm:$0xff] }
  0x3a   :  { %1366 = vmatpush3.bf16.msra.mxu0 %v1363_v16  ;;  %1391 = vmatpush3.bf16.msra.mxu1 %v1363_v16  ;;  %v96_v3 = vld [vmem:[#allocation2 + $0x1a8] sm:$0xff]  ;;  %v65_v4 = vld [vmem:[#allocation2 + $0xb0] sm:$0xff]  ;;  %v66_v6 = vld [vmem:[#allocation2 + $0xb8] sm:$0xff] }
  0x3b   :  { %1368 = vmatprep.subr.bf16.mxu0 %v1367_v19  ;;  %1384 = vmatprep.subr.bf16.mxu1 %v1367_v19  ;;  %v97_v5 = vld [vmem:[#allocation2 + $0x1b0] sm:$0xff]  ;;  %v98_v7 = vld [vmem:[#allocation2 + $0x1b8] sm:$0xff]  ;;  %v67_v8 = vld [vmem:[#allocation2 + $0xc0] sm:$0xff] }
  0x3c   :  { %v99_v9 = vld [vmem:[#allocation2 + $0x1c0] sm:$0xff]  ;;  %v68_v10 = vld [vmem:[#allocation2 + $0xc8] sm:$0xff]  ;;  %v69_v12 = vld [vmem:[#allocation2 + $0xd0] sm:$0xff] }
  0x3d   :  { %v100_v11 = vld [vmem:[#allocation2 + $0x1c8] sm:$0xff]  ;;  %v101_v13 = vld [vmem:[#allocation2 + $0x1d0] sm:$0xff]  ;;  %v70_v14 = vld [vmem:[#allocation2 + $0xd8] sm:$0xff] }
  0x3e   :  { %1370 = vmatpush3.bf16.msra.mxu0 %v1367_v19  ;;  %1392 = vmatpush3.bf16.msra.mxu1 %v1367_v19  ;;  %v102_v15 = vld [vmem:[#allocation2 + $0x1d8] sm:$0xff]  ;;  %v71_v16 = vld [vmem:[#allocation2 + $0xe0] sm:$0xff]  ;;  %v72_v18 = vld [vmem:[#allocation2 + $0xe8] sm:$0xff] }
  0x3f   :  { %1372 = vmatprep.subr.bf16.mxu0 %v1371_v22  ;;  %1385 = vmatprep.subr.bf16.mxu1 %v1371_v22  ;;  %v103_v17 = vld [vmem:[#allocation2 + $0x1e0] sm:$0xff]  ;;  %v104_v19 = vld [vmem:[#allocation2 + $0x1e8] sm:$0xff]  ;;  %v73_v20 = vld [vmem:[#allocation2 + $0xf0] sm:$0xff] }
  0x40   :  { %v105_v21 = vld [vmem:[#allocation2 + $0x1f0] sm:$0xff]  ;;  %v106_v23 = vld [vmem:[#allocation2 + $0x1f8] sm:$0xff]  ;;  %v1534_v24 = vld [vmem:[%s2828_s2] ss:$0 sm:$0xff]  ;;  %s1480_s2 = smov [#allocation7]  }
  0x41   :  { %s1125_s11 = sshll.u32 %s1480_s2, 4  ;;  %s1126_s11 = int_to_ptr.vmem [resolvable:$true] %s1125_s11 }
  0x42   :  { %1374 = vmatpush3.bf16.msra.mxu0 %v1371_v22  ;;  %1393 = vmatpush3.bf16.msra.mxu1 %v1371_v22  ;;  %v74_v22 = vld [vmem:[#allocation2 + $0xf8] sm:$0xff]  ;;  %s1448_s12 = scalar_lea.vmem %s1126_s11, 8192  ;;  %p1453_p3 = scmp.lt.s32.totalorder %s1126_s11, %s1126_s11 }
  0x43   :  { %1376 = vmatprep.subr.bf16.mxu0 %v1375_v25  ;;  %1386 = vmatprep.subr.bf16.mxu1 %v1375_v25  ;;  %p1449_p2 = scmp.ne.s32.totalorder %s1126_s11, %s1448_s12  ;;  %p1454_p4 = scmp.lt.s32.totalorder %s1448_s12, %s1448_s12 }
  0x45   :  { %p1455_p5 = por %p1454_p4, %p1453_p3 }
  0x46   :  { %1378 = vmatpush3.bf16.msra.mxu0 %v1375_v25  ;;  %1394 = vmatpush3.bf16.msra.mxu1 %v1375_v25 }
  0x47   :  { %p1456_p6 = pnand %p1455_p5, %p1449_p2 }
  0x49   :  { %1252 = vmatmul.mubr.f32.vlgmr.msra.gmra.mrb[0].mxu0 %v44_v26  ;;  %1300 = vmatmul.mubr.f32.vlgmr.msra.gmra.mrb[0].mxu1 %v76_v27 }
  0x4a   :  { %1254 = vmatprep.mubr.f32.mxu0 %v45_v28  ;;  %1302 = vmatprep.mubr.f32.mxu1 %v77_v29 }
  0x4d   :  { %1255 = vmatmul.mubr.f32.gmra.mrb[2].mxu0 %v46_v30  ;;  %1303 = vmatmul.mubr.f32.gmra.mrb[2].mxu1 %v78_v31 }
  0x4e   :  { %1257 = vmatprep.mubr.f32.mxu0 %v47_v32  ;;  %1305 = vmatprep.mubr.f32.mxu1 %v79_v33 }
  0x51   :  { %1258 = vmatmul.mubr.f32.gmra.mrb[4].mxu0 %v48_v34  ;;  %1306 = vmatmul.mubr.f32.gmra.mrb[4].mxu1 %v80_v35 }
  0x52   :  { %1260 = vmatprep.mubr.f32.mxu0 %v49_v36  ;;  %1308 = vmatprep.mubr.f32.mxu1 %v81_v37 }
  0x55   :  { %1261 = vmatmul.mubr.f32.gmra.mrb[6].mxu0 %v50_v38  ;;  %1309 = vmatmul.mubr.f32.gmra.mrb[6].mxu1 %v82_v39 }
  0x56   :  { %1263 = vmatprep.mubr.f32.mxu0 %v51_v40  ;;  %1311 = vmatprep.mubr.f32.mxu1 %v83_v41 }
  0x59   :  { %1264 = vmatmul.mubr.f32.gmra.mrb[8].mxu0 %v52_v42  ;;  %1312 = vmatmul.mubr.f32.gmra.mrb[8].mxu1 %v84_v43 }
  0x5a   :  { %1266 = vmatprep.mubr.f32.mxu0 %v53_v44  ;;  %1314 = vmatprep.mubr.f32.mxu1 %v85_v45 }
  0x5d   :  { %1267 = vmatmul.mubr.f32.gmra.mrb[10].mxu0 %v54_v46  ;;  %1315 = vmatmul.mubr.f32.gmra.mrb[10].mxu1 %v86_v47 }
  0x5e   :  { %1269 = vmatprep.mubr.f32.mxu0 %v55_v48  ;;  %1317 = vmatprep.mubr.f32.mxu1 %v87_v49 }
  0x61   :  { %1270 = vmatmul.mubr.f32.gmra.mrb[12].mxu0 %v56_v50  ;;  %1318 = vmatmul.mubr.f32.gmra.mrb[12].mxu1 %v88_v51 }
  0x62   :  { %1272 = vmatprep.mubr.f32.mxu0 %v57_v52  ;;  %1320 = vmatprep.mubr.f32.mxu1 %v89_v53 }
  0x65   :  { %1273 = vmatmul.mubr.f32.gmra.mrb[14].mxu0 %v58_v54  ;;  %1321 = vmatmul.mubr.f32.gmra.mrb[14].mxu1 %v90_v55 }
  0x66   :  { %1275 = vmatprep.mubr.f32.mxu0 %v59_v56  ;;  %1323 = vmatprep.mubr.f32.mxu1 %v91_v57 }
  0x69   :  { %1276 = vmatmul.mubr.f32.gmra.mrb[16].mxu0 %v60_v58  ;;  %1324 = vmatmul.mubr.f32.gmra.mrb[16].mxu1 %v92_v59 }
  0x6a   :  { %1278 = vmatprep.mubr.f32.mxu0 %v61_v60  ;;  %1326 = vmatprep.mubr.f32.mxu1 %v93_v61 }
  0x6d   :  { %1279 = vmatmul.mubr.f32.gmra.mrb[18].mxu0 %v62_v62  ;;  %1327 = vmatmul.mubr.f32.gmra.mrb[18].mxu1 %v94_v63 }
  0x6e   :  { %1281 = vmatprep.mubr.f32.mxu0 %v63_v0  ;;  %1329 = vmatprep.mubr.f32.mxu1 %v95_v1 }
  0x71   :  { %1282 = vmatmul.mubr.f32.gmra.mrb[20].mxu0 %v64_v2  ;;  %1330 = vmatmul.mubr.f32.gmra.mrb[20].mxu1 %v96_v3 }
  0x72   :  { %1284 = vmatprep.mubr.f32.mxu0 %v65_v4  ;;  %1332 = vmatprep.mubr.f32.mxu1 %v97_v5 }
  0x75   :  { %1285 = vmatmul.mubr.f32.gmra.mrb[22].mxu0 %v66_v6  ;;  %1333 = vmatmul.mubr.f32.gmra.mrb[22].mxu1 %v98_v7 }
  0x76   :  { %1287 = vmatprep.mubr.f32.mxu0 %v67_v8  ;;  %1335 = vmatprep.mubr.f32.mxu1 %v99_v9 }
  0x79   :  { %1288 = vmatmul.mubr.f32.gmra.mrb[24].mxu0 %v68_v10  ;;  %1336 = vmatmul.mubr.f32.gmra.mrb[24].mxu1 %v100_v11 }
  0x7a   :  { %1290 = vmatprep.mubr.f32.mxu0 %v69_v12  ;;  %1338 = vmatprep.mubr.f32.mxu1 %v101_v13 }
  0x7d   :  { %1291 = vmatmul.mubr.f32.gmra.mrb[26].mxu0 %v70_v14  ;;  %1339 = vmatmul.mubr.f32.gmra.mrb[26].mxu1 %v102_v15 }
  0x7e   :  { %1293 = vmatprep.mubr.f32.mxu0 %v71_v16  ;;  %1341 = vmatprep.mubr.f32.mxu1 %v103_v17 }
  0x81   :  { %1294 = vmatmul.mubr.f32.gmra.mrb[28].mxu0 %v72_v18  ;;  %1342 = vmatmul.mubr.f32.gmra.mrb[28].mxu1 %v104_v19 }
  0x82   :  { %1296 = vmatprep.mubr.f32.mxu0 %v73_v20  ;;  %1344 = vmatprep.mubr.f32.mxu1 %v105_v21 }
  0x85   :  { %1297 = vmatmul.mubr.f32.gmra.mrb[30].mxu0 %v74_v22  ;;  %1345 = vmatmul.mubr.f32.gmra.mrb[30].mxu1 %v106_v23 }
 0x11c   :  { %v1253_v25 = vpop.f32.mrb[0].mxu0  ;;  %v1301_v26 = vpop.f32.mrb[0].mxu1 }
 0x11d   :  { %v196_v27 = vpop.f32.mrb[1].mxu0  ;;  %v356_v28 = vpop.f32.mrb[1].mxu1  ;;  %v1537_v29 = vadd.f32 %v1253_v25, %v1534_v24  ;;  %v1540_v30 = vadd.f32 %v1301_v26, %v1534_v24 }
 0x11e   :  { %v1543_v31 = vadd.f32 %v1534_v24, %v196_v27  ;;  %v1546_v32 = vadd.f32 %v1534_v24, %v356_v28 }
 0x11f   :  { %2877 = vst [vmem:[#allocation11_spill] sm:$0xff] %v1540_v30 }
 0x120   :  { %2878 = vst [vmem:[#allocation12_spill] sm:$0xff] %v1546_v32  ;;  %v1256_v33 = vpop.f32.mrb[2].mxu0  ;;  %v1304_v34 = vpop.f32.mrb[2].mxu1  ;;  %v515_v37 = vadd.f32 %v1537_v29, %v1543_v31  ;;  %v552_v38 = vadd.f32 %v1540_v30, %v1546_v32 }
 0x121   :  { %v206_v35 = vpop.f32.mrb[3].mxu0  ;;  %v366_v36 = vpop.f32.mrb[3].mxu1  ;;  %v1559_v41 = vadd.f32 %v1256_v33, %v1534_v24  ;;  %v1562_v42 = vadd.f32 %v1304_v34, %v1534_v24 }
 0x122   :  { %v1553_v39 = vadd.f32 %v1534_v24, %v206_v35  ;;  %v1556_v40 = vadd.f32 %v1534_v24, %v366_v36 }
 0x123   :  { %2880 = vst [vmem:[#allocation14_spill] sm:$0xff] %v1562_v42 }
 0x124   :  { %2879 = vst [vmem:[#allocation13_spill] sm:$0xff] %v1556_v40  ;;  %v516_v43 = vadd.f32 %v515_v37, %v1553_v39  ;;  %v553_v44 = vadd.f32 %v552_v38, %v1556_v40  ;;  %v1259_v45 = vpop.f32.mrb[4].mxu0  ;;  %v1307_v46 = vpop.f32.mrb[4].mxu1 }
 0x125   :  { %v216_v47 = vpop.f32.mrb[5].mxu0  ;;  %v376_v48 = vpop.f32.mrb[5].mxu1  ;;  %v1575_v53 = vadd.f32 %v1259_v45, %v1534_v24  ;;  %v1578_v54 = vadd.f32 %v1307_v46, %v1534_v24 }
 0x126   :  { %v1567_v49 = vadd.f32 %v1534_v24, %v216_v47  ;;  %v517_v50 = vadd.f32 %v516_v43, %v1559_v41  ;;  %v1571_v51 = vadd.f32 %v1534_v24, %v376_v48  ;;  %v554_v52 = vadd.f32 %v553_v44, %v1562_v42 }
 0x127   :  { %2882 = vst [vmem:[#allocation16_spill] sm:$0xff] %v1578_v54 }
 0x128   :  { %2881 = vst [vmem:[#allocation15_spill] sm:$0xff] %v1571_v51  ;;  %v518_v55 = vadd.f32 %v517_v50, %v1567_v49  ;;  %v555_v56 = vadd.f32 %v554_v52, %v1571_v51  ;;  %v1262_v57 = vpop.f32.mrb[6].mxu0  ;;  %v1310_v58 = vpop.f32.mrb[6].mxu1 }
 0x129   :  { %v226_v59 = vpop.f32.mrb[7].mxu0  ;;  %v386_v60 = vpop.f32.mrb[7].mxu1  ;;  %v1591_v1 = vadd.f32 %v1262_v57, %v1534_v24  ;;  %v1594_v2 = vadd.f32 %v1310_v58, %v1534_v24 }
 0x12a   :  { %v1583_v61 = vadd.f32 %v1534_v24, %v226_v59  ;;  %v519_v62 = vadd.f32 %v518_v55, %v1575_v53  ;;  %v1587_v63 = vadd.f32 %v1534_v24, %v386_v60  ;;  %v556_v0 = vadd.f32 %v555_v56, %v1578_v54 }
 0x12b   :  { %2884 = vst [vmem:[#allocation18_spill] sm:$0xff] %v1594_v2 }
 0x12c   :  { %2883 = vst [vmem:[#allocation17_spill] sm:$0xff] %v1587_v63  ;;  %v520_v3 = vadd.f32 %v519_v62, %v1583_v61  ;;  %v557_v4 = vadd.f32 %v556_v0, %v1587_v63  ;;  %v1265_v5 = vpop.f32.mrb[8].mxu0  ;;  %v1313_v6 = vpop.f32.mrb[8].mxu1 }
 0x12d   :  { %v236_v7 = vpop.f32.mrb[9].mxu0  ;;  %v396_v8 = vpop.f32.mrb[9].mxu1  ;;  %v1607_v13 = vadd.f32 %v1265_v5, %v1534_v24  ;;  %v1610_v14 = vadd.f32 %v1313_v6, %v1534_v24 }
 0x12e   :  { %v1599_v9 = vadd.f32 %v1534_v24, %v236_v7  ;;  %v521_v10 = vadd.f32 %v520_v3, %v1591_v1  ;;  %v1603_v11 = vadd.f32 %v1534_v24, %v396_v8  ;;  %v558_v12 = vadd.f32 %v557_v4, %v1594_v2 }
 0x12f   :  { %2886 = vst [vmem:[#allocation20_spill] sm:$0xff] %v1610_v14 }
 0x130   :  { %2885 = vst [vmem:[#allocation19_spill] sm:$0xff] %v1603_v11  ;;  %v522_v15 = vadd.f32 %v521_v10, %v1599_v9  ;;  %v559_v16 = vadd.f32 %v558_v12, %v1603_v11  ;;  %v1268_v17 = vpop.f32.mrb[10].mxu0  ;;  %v1316_v18 = vpop.f32.mrb[10].mxu1 }
 0x131   :  { %v246_v19 = vpop.f32.mrb[11].mxu0  ;;  %v406_v20 = vpop.f32.mrb[11].mxu1  ;;  %v1623_v26 = vadd.f32 %v1268_v17, %v1534_v24  ;;  %v1626_v27 = vadd.f32 %v1316_v18, %v1534_v24 }
 0x132   :  { %v1615_v21 = vadd.f32 %v1534_v24, %v246_v19  ;;  %v523_v22 = vadd.f32 %v522_v15, %v1607_v13  ;;  %v1619_v23 = vadd.f32 %v1534_v24, %v406_v20  ;;  %v560_v25 = vadd.f32 %v559_v16, %v1610_v14 }
 0x133   :  { %2888 = vst [vmem:[#allocation22_spill] sm:$0xff] %v1626_v27 }
 0x134   :  { %2887 = vst [vmem:[#allocation21_spill] sm:$0xff] %v1619_v23  ;;  %v524_v28 = vadd.f32 %v523_v22, %v1615_v21  ;;  %v561_v33 = vadd.f32 %v560_v25, %v1619_v23  ;;  %v1271_v34 = vpop.f32.mrb[12].mxu0  ;;  %v1319_v35 = vpop.f32.mrb[12].mxu1 }
 0x135   :  { %v256_v36 = vpop.f32.mrb[13].mxu0  ;;  %v416_v37 = vpop.f32.mrb[13].mxu1  ;;  %v1639_v46 = vadd.f32 %v1271_v34, %v1534_v24  ;;  %v1642_v47 = vadd.f32 %v1319_v35, %v1534_v24 }
 0x136   :  { %v1631_v38 = vadd.f32 %v1534_v24, %v256_v36  ;;  %v525_v43 = vadd.f32 %v524_v28, %v1623_v26  ;;  %v1635_v44 = vadd.f32 %v1534_v24, %v416_v37  ;;  %v562_v45 = vadd.f32 %v561_v33, %v1626_v27 }
 0x137   :  { %2890 = vst [vmem:[#allocation24_spill] sm:$0xff] %v1642_v47 }
 0x138   :  { %2889 = vst [vmem:[#allocation23_spill] sm:$0xff] %v1635_v44  ;;  %v526_v48 = vadd.f32 %v525_v43, %v1631_v38  ;;  %v563_v50 = vadd.f32 %v562_v45, %v1635_v44  ;;  %v1274_v52 = vpop.f32.mrb[14].mxu0  ;;  %v1322_v55 = vpop.f32.mrb[14].mxu1 }
 0x139   :  { %v266_v56 = vpop.f32.mrb[15].mxu0  ;;  %v426_v57 = vpop.f32.mrb[15].mxu1  ;;  %v1655_v0 = vadd.f32 %v1274_v52, %v1534_v24  ;;  %v1658_v3 = vadd.f32 %v1322_v55, %v1534_v24 }
 0x13a   :  { %v1647_v58 = vadd.f32 %v1534_v24, %v266_v56  ;;  %v527_v59 = vadd.f32 %v526_v48, %v1639_v46  ;;  %v1651_v60 = vadd.f32 %v1534_v24, %v426_v57  ;;  %v564_v62 = vadd.f32 %v563_v50, %v1642_v47 }
 0x13b   :  { %2892 = vst [vmem:[#allocation26_spill] sm:$0xff] %v1658_v3 }
 0x13c   :  { %2891 = vst [vmem:[#allocation25_spill] sm:$0xff] %v1651_v60  ;;  %v528_v4 = vadd.f32 %v527_v59, %v1647_v58  ;;  %v565_v5 = vadd.f32 %v564_v62, %v1651_v60  ;;  %v1277_v6 = vpop.f32.mrb[16].mxu0  ;;  %v1325_v7 = vpop.f32.mrb[16].mxu1 }
 0x13d   :  { %v276_v8 = vpop.f32.mrb[17].mxu0  ;;  %v436_v10 = vpop.f32.mrb[17].mxu1  ;;  %v1671_v18 = vadd.f32 %v1277_v6, %v1534_v24  ;;  %v1674_v19 = vadd.f32 %v1325_v7, %v1534_v24 }
 0x13e   :  { %v1663_v12 = vadd.f32 %v1534_v24, %v276_v8  ;;  %v529_v15 = vadd.f32 %v528_v4, %v1655_v0  ;;  %v1667_v16 = vadd.f32 %v1534_v24, %v436_v10  ;;  %v566_v17 = vadd.f32 %v565_v5, %v1658_v3 }
 0x13f   :  { %2894 = vst [vmem:[#allocation28_spill] sm:$0xff] %v1674_v19 }
 0x140   :  { %2893 = vst [vmem:[#allocation27_spill] sm:$0xff] %v1667_v16  ;;  %v530_v20 = vadd.f32 %v529_v15, %v1663_v12  ;;  %v567_v22 = vadd.f32 %v566_v17, %v1667_v16  ;;  %v1280_v25 = vpop.f32.mrb[18].mxu0  ;;  %v1328_v28 = vpop.f32.mrb[18].mxu1 }
 0x141   :  { %v286_v33 = vpop.f32.mrb[19].mxu0  ;;  %v446_v34 = vpop.f32.mrb[19].mxu1  ;;  %v1687_v45 = vadd.f32 %v1280_v25, %v1534_v24  ;;  %v1690_v48 = vadd.f32 %v1328_v28, %v1534_v24 }
 0x142   :  { %v1679_v35 = vadd.f32 %v1534_v24, %v286_v33  ;;  %v531_v36 = vadd.f32 %v530_v20, %v1671_v18  ;;  %v1683_v37 = vadd.f32 %v1534_v24, %v446_v34  ;;  %v568_v43 = vadd.f32 %v567_v22, %v1674_v19 }
 0x144   :  { %v532_v50 = vadd.f32 %v531_v36, %v1679_v35  ;;  %v569_v52 = vadd.f32 %v568_v43, %v1683_v37  ;;  %v1283_v55 = vpop.f32.mrb[20].mxu0  ;;  %v1331_v56 = vpop.f32.mrb[20].mxu1 }
 0x145   :  { %v1695_v57 = vadd.f32 %v1331_v56, %v1534_v24  ;;  %v296_v59 = vpop.f32.mrb[21].mxu0  ;;  %v456_v62 = vpop.f32.mrb[21].mxu1  ;;  %v1706_v8 = vadd.f32 %v1283_v55, %v1534_v24 }
 0x146   :  { %v1698_v4 = vadd.f32 %v1534_v24, %v296_v59  ;;  %v533_v5 = vadd.f32 %v532_v50, %v1687_v45  ;;  %v1702_v6 = vadd.f32 %v1534_v24, %v456_v62  ;;  %v570_v7 = vadd.f32 %v569_v52, %v1690_v48 }
 0x148   :  { %v534_v10 = vadd.f32 %v533_v5, %v1698_v4  ;;  %v571_v15 = vadd.f32 %v570_v7, %v1702_v6  ;;  %v1286_v17 = vpop.f32.mrb[22].mxu0  ;;  %v1334_v20 = vpop.f32.mrb[22].mxu1 }
 0x149   :  { %v1711_v22 = vadd.f32 %v1334_v20, %v1534_v24  ;;  %v306_v25 = vpop.f32.mrb[23].mxu0  ;;  %v466_v28 = vpop.f32.mrb[23].mxu1  ;;  %v1722_v50 = vadd.f32 %v1286_v17, %v1534_v24 }
 0x14a   :  { %v1714_v33 = vadd.f32 %v1534_v24, %v306_v25  ;;  %v535_v34 = vadd.f32 %v534_v10, %v1706_v8  ;;  %v1718_v36 = vadd.f32 %v1534_v24, %v466_v28  ;;  %v572_v43 = vadd.f32 %v571_v15, %v1695_v57 }
 0x14c   :  { %v536_v52 = vadd.f32 %v535_v34, %v1714_v33  ;;  %v573_v55 = vadd.f32 %v572_v43, %v1718_v36  ;;  %v1289_v56 = vpop.f32.mrb[24].mxu0  ;;  %v1337_v59 = vpop.f32.mrb[24].mxu1 }
 0x14d   :  { %v1727_v62 = vadd.f32 %v1337_v59, %v1534_v24  ;;  %v316_v5 = vpop.f32.mrb[25].mxu0  ;;  %v476_v7 = vpop.f32.mrb[25].mxu1  ;;  %v1738_v25 = vadd.f32 %v1289_v56, %v1534_v24 }
 0x14e   :  { %v1730_v10 = vadd.f32 %v1534_v24, %v316_v5  ;;  %v537_v20 = vadd.f32 %v536_v52, %v1722_v50  ;;  %v1734_v15 = vadd.f32 %v1534_v24, %v476_v7  ;;  %v574_v17 = vadd.f32 %v573_v55, %v1711_v22 }
 0x150   :  { %v538_v28 = vadd.f32 %v537_v20, %v1730_v10  ;;  %v575_v34 = vadd.f32 %v574_v17, %v1734_v15  ;;  %v1292_v43 = vpop.f32.mrb[26].mxu0  ;;  %v1340_v59 = vpop.f32.mrb[26].mxu1 }
 0x151   :  { %v1743_v19 = vadd.f32 %v1340_v59, %v1534_v24  ;;  %v326_v5 = vpop.f32.mrb[27].mxu0  ;;  %v486_v16 = vpop.f32.mrb[27].mxu1  ;;  %v332_v20 = vadd.f32 %v1292_v43, %v1534_v24 }
 0x152   :  { %v327_v52 = vadd.f32 %v1534_v24, %v326_v5  ;;  %v539_v7 = vadd.f32 %v538_v28, %v1738_v25  ;;  %v1748_v55 = vadd.f32 %v1534_v24, %v486_v16  ;;  %v576_v56 = vadd.f32 %v575_v34, %v1727_v62 }
 0x153   :  { %2895 = vst [vmem:[#allocation29_spill] sm:$0xff] %v1743_v19 }
 0x154   :  { %v540_v3 = vadd.f32 %v539_v7, %v327_v52  ;;  %v577_v17 = vadd.f32 %v576_v56, %v1748_v55  ;;  %v1295_v60 = vpop.f32.mrb[28].mxu0  ;;  %v1343_v47 = vpop.f32.mrb[28].mxu1 }
 0x155   :  { %v1754_v59 = vadd.f32 %v1343_v47, %v1534_v24  ;;  %v336_v44 = vpop.f32.mrb[29].mxu0  ;;  %v496_v27 = vpop.f32.mrb[29].mxu1  ;;  %v342_v43 = vadd.f32 %v1295_v60, %v1534_v24 }
 0x156   :  { %v337_v5 = vadd.f32 %v1534_v24, %v336_v44  ;;  %v541_v28 = vadd.f32 %v540_v3, %v332_v20  ;;  %v1758_v16 = vadd.f32 %v1534_v24, %v496_v27  ;;  %v578_v34 = vadd.f32 %v577_v17, %v1743_v19 }
 0x158   :  { %2896 = vst [vmem:[#allocation30_spill] sm:$0xff] %v1758_v16  ;;  %v542_v7 = vadd.f32 %v541_v28, %v337_v5  ;;  %v579_v56 = vadd.f32 %v578_v34, %v1758_v16  ;;  %v1298_v23 = vpop.f32.mrb[30].mxu0  ;;  %v1346_v14 = vpop.f32.mrb[30].mxu1 }
 0x159   :  { %v1764_v47 = vadd.f32 %v1346_v14, %v1534_v24  ;;  %v346_v11 = vpop.f32.mrb[31].mxu0  ;;  %v506_v2 = vpop.f32.mrb[31].mxu1  ;;  %v352_v60 = vadd.f32 %v1298_v23, %v1534_v24 }
 0x15a   :  { %v347_v44 = vadd.f32 %v1534_v24, %v346_v11  ;;  %v543_v3 = vadd.f32 %v542_v7, %v342_v43  ;;  %v1768_v27 = vadd.f32 %v1534_v24, %v506_v2  ;;  %v580_v17 = vadd.f32 %v579_v56, %v1754_v59 }
 0x15c   :  { %v544_v28 = vadd.f32 %v543_v3, %v347_v44  ;;  %v581_v34 = vadd.f32 %v580_v17, %v1768_v27 }
 0x15e   :  { %v545_v63 = vadd.f32 %v544_v28, %v352_v60  ;;  %v582_v54 = vadd.f32 %v581_v34, %v1764_v47 }
 0x160   :  { %v546_v14 = vrot.slane %v545_v63, 4  ;;  %v583_v42 = vrot.slane %v582_v54, 4 }
 0x162   :  { %v547_v51 = vadd.f32 %v546_v14, %v545_v63  ;;  %v584_v11 = vadd.f32 %v583_v42, %v582_v54 }
 0x164   :  { %v548_v40 = vrot.slane %v547_v51, 2  ;;  %v585_v2 = vrot.slane %v584_v11, 2 }
 0x166   :  { %v549_v30 = vadd.f32 %v548_v40, %v547_v51  ;;  %v586_v19 = vadd.f32 %v585_v2, %v584_v11  ;;  %v2900_v2 = vld [vmem:[#allocation29_spill] sm:$0xff] }
 0x168   :  { %v550_v7 = vrot.slane %v549_v30, 1 }
 0x16a   :  { %v551_v32 = vadd.f32 %v550_v7, %v549_v30 }
 0x16c   :  { %v590_v16 = vmul.f32 0.00390625, %v551_v32 }
 0x16e   :  { %v1775_v56 = vsub.f32 %v1599_v9, %v590_v16  ;;  %v1778_v24 = vsub.f32 %v1607_v13, %v590_v16  ;;  %v1781_v23 = vsub.f32 %v1615_v21, %v590_v16  ;;  %v1784_v63 = vsub.f32 %v1623_v26, %v590_v16 }
 0x16f   :  { %v1787_v40 = vsub.f32 %v1631_v38, %v590_v16  ;;  %v1790_v30 = vsub.f32 %v1639_v46, %v590_v16  ;;  %v1793_v32 = vsub.f32 %v1647_v58, %v590_v16  ;;  %v1796_v42 = vsub.f32 %v1655_v0, %v590_v16 }
 0x170   :  { %2897 = vst [vmem:[#allocation31_spill] sm:$0xff] %v1784_v63  ;;  %v1799_v51 = vsub.f32 %v1663_v12, %v590_v16  ;;  %v1802_v54 = vsub.f32 %v1671_v18, %v590_v16  ;;  %v1805_v9 = vsub.f32 %v1679_v35, %v590_v16  ;;  %v1808_v13 = vsub.f32 %v1687_v45, %v590_v16 }
 0x171   :  { %v1811_v21 = vsub.f32 %v1698_v4, %v590_v16  ;;  %v1814_v26 = vsub.f32 %v1706_v8, %v590_v16  ;;  %v1817_v38 = vsub.f32 %v1714_v33, %v590_v16  ;;  %v1820_v46 = vsub.f32 %v1722_v50, %v590_v16 }
 0x172   :  { %v1823_v58 = vsub.f32 %v1730_v10, %v590_v16  ;;  %v1826_v0 = vsub.f32 %v1738_v25, %v590_v16  ;;  %v1828_v12 = vsub.f32 %v327_v52, %v590_v16  ;;  %v1830_v18 = vsub.f32 %v332_v20, %v590_v16 }
 0x173   :  { %v1832_v35 = vsub.f32 %v337_v5, %v590_v16  ;;  %v1834_v45 = vsub.f32 %v342_v43, %v590_v16  ;;  %v1836_v4 = vsub.f32 %v347_v44, %v590_v16  ;;  %v1838_v8 = vsub.f32 %v352_v60, %v590_v16 }
 0x174   :  { %v1841_v33 = vsub.f32 %v1543_v31, %v590_v16  ;;  %v1844_v50 = vsub.f32 %v1537_v29, %v590_v16  ;;  %v587_v10 = vrot.slane %v586_v19, 1  ;;  %v1847_v25 = vsub.f32 %v1553_v39, %v590_v16 }
 0x175   :  { %v1854_v43 = vsub.f32 %v1559_v41, %v590_v16  ;;  %v1857_v31 = vsub.f32 %v1567_v49, %v590_v16  ;;  %v1860_v29 = vsub.f32 %v1575_v53, %v590_v16  ;;  %v1865_v3 = vsub.f32 %v1583_v61, %v590_v16 }
 0x176   :  { %v656_v52 = vmul.f32 %v1841_v33, %v1841_v33  ;;  %v657_v20 = vmul.f32 %v1844_v50, %v1844_v50  ;;  %v588_v5 = vadd.f32 %v587_v10, %v586_v19  ;;  %v658_v39 = vmul.f32 %v1847_v25, %v1847_v25 }
 0x177   :  { %v659_v19 = vmul.f32 %v1854_v43, %v1854_v43  ;;  %v1872_v60 = vsub.f32 %v1591_v1, %v590_v16  ;;  %v660_v49 = vmul.f32 %v1857_v31, %v1857_v31  ;;  %v661_v53 = vmul.f32 %v1860_v29, %v1860_v29 }
 0x178   :  { %v720_v44 = vadd.f32 %v657_v20, %v656_v52  ;;  %v1867_v17 = vmul.f32 0.00390625, %v588_v5  ;;  %v662_v61 = vmul.f32 %v1865_v3, %v1865_v3 }
 0x179   :  { %v663_v20 = vmul.f32 %v1872_v60, %v1872_v60 }
 0x17a   :  { %v721_v41 = vadd.f32 %v720_v44, %v658_v39  ;;  %v1882_v34 = vsub.f32 %v1683_v37, %v1867_v17  ;;  %v1886_v14 = vsub.f32 %v1690_v48, %v1867_v17  ;;  %v1890_v1 = vsub.f32 %v1702_v6, %v1867_v17  ;;  %v2903_v39 = vld [vmem:[#allocation12_spill] sm:$0xff] }
 0x17b   :  { %v1894_v11 = vsub.f32 %v1695_v57, %v1867_v17  ;;  %v1898_v7 = vsub.f32 %v1718_v36, %v1867_v17  ;;  %v1902_v37 = vsub.f32 %v1711_v22, %v1867_v17  ;;  %v1906_v48 = vsub.f32 %v1734_v15, %v1867_v17  ;;  %v2901_v22 = vld [vmem:[#allocation30_spill] sm:$0xff] }
 0x17c   :  { %v722_v28 = vadd.f32 %v721_v41, %v659_v19  ;;  %2898 = vst [vmem:[#allocation32_spill] sm:$0xff] %v1890_v1  ;;  %v1910_v6 = vsub.f32 %v1727_v62, %v1867_v17  ;;  %v1914_v57 = vsub.f32 %v1748_v55, %v1867_v17  ;;  %v1918_v36 = vsub.f32 %v2900_v2, %v1867_v17  ;;  %v2905_v19 = vld [vmem:[#allocation11_spill] sm:$0xff] }
 0x17d   :  { %2899 = vst [vmem:[#allocation33_spill] sm:$0xff] %v1894_v11  ;;  %v1922_v52 = vsub.f32 %v2901_v22, %v1867_v17  ;;  %v1926_v15 = vsub.f32 %v1754_v59, %v1867_v17  ;;  %v1930_v62 = vsub.f32 %v1768_v27, %v1867_v17  ;;  %v1934_v55 = vsub.f32 %v1764_v47, %v1867_v17  ;;  %v2909_v22 = vld [vmem:[#allocation14_spill] sm:$0xff] }
 0x17e   :  { %v723_v16 = vadd.f32 %v722_v28, %v660_v49  ;;  %v1940_v44 = vsub.f32 %v2903_v39, %v1867_v17  ;;  %v1944_v59 = vsub.f32 %v2905_v19, %v1867_v17  ;;  %v664_v27 = vmul.f32 %v1775_v56, %v1775_v56  ;;  %v2911_v19 = vld [vmem:[#allocation15_spill] sm:$0xff] }
 0x17f   :  { %2902 = vst [vmem:[#allocation29_spill] sm:$0xff] %v1922_v52  ;;  %v665_v47 = vmul.f32 %v1778_v24, %v1778_v24  ;;  %v666_v2 = vmul.f32 %v1781_v23, %v1781_v23 }
 0x180   :  { %v724_v10 = vadd.f32 %v723_v16, %v661_v53  ;;  %2904 = vst [vmem:[#allocation30_spill] sm:$0xff] %v1940_v44  ;;  %2906 = vst [vmem:[#allocation12_spill] sm:$0xff] %v1944_v59  ;;  %v2907_v53 = vld [vmem:[#allocation13_spill] sm:$0xff]  ;;  %v689_v16 = vmul.f32 %v1944_v59, %v1944_v59  ;;  %v668_v59 = vmul.f32 %v1787_v40, %v1787_v40 }
 0x181   :  { %v1952_v28 = vsub.f32 %v2907_v53, %v1867_v17 }
 0x182   :  { %v725_v5 = vadd.f32 %v724_v10, %v662_v61  ;;  %v688_v61 = vmul.f32 %v1940_v44, %v1940_v44 }
 0x183   :  { %2908 = vst [vmem:[#allocation11_spill] sm:$0xff] %v1952_v28 }
 0x184   :  { %v726_v41 = vadd.f32 %v725_v5, %v663_v20  ;;  %v1962_v20 = vsub.f32 %v2909_v22, %v1867_v17  ;;  %v667_v5 = vmul.f32 %v1784_v63, %v1784_v63  ;;  %v757_v53 = vadd.f32 %v689_v16, %v688_v61  ;;  %v2915_v63 = vld [vmem:[#allocation17_spill] sm:$0xff] }
 0x186   :  { %v727_v49 = vadd.f32 %v726_v41, %v664_v27  ;;  %2910 = vst [vmem:[#allocation13_spill] sm:$0xff] %v1962_v20  ;;  %v1968_v27 = vsub.f32 %v2911_v19, %v1867_v17  ;;  %v690_v41 = vmul.f32 %v1952_v28, %v1952_v28  ;;  %v691_v44 = vmul.f32 %v1962_v20, %v1962_v20 }
 0x187   :  { %v1984_v28 = vsub.f32 %v2915_v63, %v1867_v17  ;;  %v671_v63 = vmul.f32 %v1796_v42, %v1796_v42 }
 0x188   :  { %v728_v10 = vadd.f32 %v727_v49, %v665_v47  ;;  %2912 = vst [vmem:[#allocation14_spill] sm:$0xff] %v1968_v27  ;;  %v2913_v49 = vld [vmem:[#allocation16_spill] sm:$0xff]  ;;  %v692_v61 = vmul.f32 %v1968_v27, %v1968_v27 }
 0x189   :  { %v1976_v22 = vsub.f32 %v2913_v49, %v1867_v17  ;;  %2916 = vst [vmem:[#allocation16_spill] sm:$0xff] %v1984_v28  ;;  %v2917_v49 = vld [vmem:[#allocation18_spill] sm:$0xff] }
 0x18a   :  { %v729_v39 = vadd.f32 %v728_v10, %v666_v2  ;;  %v758_v2 = vadd.f32 %v757_v53, %v690_v41  ;;  %v669_v10 = vmul.f32 %v1790_v30, %v1790_v30  ;;  %v1992_v20 = vsub.f32 %v2917_v49, %v1867_v17  ;;  %v2921_v49 = vld [vmem:[#allocation20_spill] sm:$0xff] }
 0x18b   :  { %2914 = vst [vmem:[#allocation15_spill] sm:$0xff] %v1976_v22  ;;  %v693_v41 = vmul.f32 %v1976_v22, %v1976_v22  ;;  %v2008_v22 = vsub.f32 %v2921_v49, %v1867_v17  ;;  %v2925_v49 = vld [vmem:[#allocation22_spill] sm:$0xff] }
 0x18c   :  { %v730_v47 = vadd.f32 %v729_v39, %v667_v5  ;;  %v759_v16 = vadd.f32 %v758_v2, %v691_v44  ;;  %v670_v5 = vmul.f32 %v1793_v32, %v1793_v32  ;;  %2918 = vst [vmem:[#allocation17_spill] sm:$0xff] %v1992_v20  ;;  %v694_v44 = vmul.f32 %v1984_v28, %v1984_v28 }
 0x18e   :  { %v731_v19 = vadd.f32 %v730_v47, %v668_v59  ;;  %v760_v59 = vadd.f32 %v759_v16, %v692_v61  ;;  %v2919_v47 = vld [vmem:[#allocation19_spill] sm:$0xff]  ;;  %v695_v61 = vmul.f32 %v1992_v20, %v1992_v20  ;;  %v2024_v20 = vsub.f32 %v2925_v49, %v1867_v17  ;;  %v2929_v49 = vld [vmem:[#allocation24_spill] sm:$0xff] }
 0x18f   :  { %v2000_v27 = vsub.f32 %v2919_v47, %v1867_v17  ;;  %2922 = vst [vmem:[#allocation19_spill] sm:$0xff] %v2008_v22  ;;  %v2923_v47 = vld [vmem:[#allocation21_spill] sm:$0xff] }
 0x190   :  { %v732_v39 = vadd.f32 %v731_v19, %v669_v10  ;;  %v761_v2 = vadd.f32 %v760_v59, %v693_v41  ;;  %v672_v10 = vmul.f32 %v1799_v51, %v1799_v51  ;;  %v2016_v28 = vsub.f32 %v2923_v47, %v1867_v17  ;;  %2926 = vst [vmem:[#allocation21_spill] sm:$0xff] %v2024_v20  ;;  %v2927_v47 = vld [vmem:[#allocation23_spill] sm:$0xff] }
 0x191   :  { %2920 = vst [vmem:[#allocation18_spill] sm:$0xff] %v2000_v27  ;;  %v696_v41 = vmul.f32 %v2000_v27, %v2000_v27  ;;  %v2032_v27 = vsub.f32 %v2927_v47, %v1867_v17  ;;  %v2931_v47 = vld [vmem:[#allocation25_spill] sm:$0xff] }
 0x192   :  { %v733_v53 = vadd.f32 %v732_v39, %v670_v5  ;;  %v762_v16 = vadd.f32 %v761_v2, %v694_v44  ;;  %v673_v5 = vmul.f32 %v1802_v54, %v1802_v54  ;;  %2924 = vst [vmem:[#allocation20_spill] sm:$0xff] %v2016_v28  ;;  %v697_v44 = vmul.f32 %v2008_v22, %v2008_v22 }
 0x193   :  { %2928 = vst [vmem:[#allocation22_spill] sm:$0xff] %v2032_v27  ;;  %v2040_v22 = vsub.f32 %v2929_v49, %v1867_v17  ;;  %v2932_v49 = vld [vmem:[#allocation26_spill] sm:$0xff] }
 0x194   :  { %v734_v19 = vadd.f32 %v733_v53, %v671_v63  ;;  %v763_v59 = vadd.f32 %v762_v16, %v695_v61  ;;  %v674_v63 = vmul.f32 %v1805_v9, %v1805_v9  ;;  %v698_v61 = vmul.f32 %v2016_v28, %v2016_v28 }
 0x195   :  { %2930 = vst [vmem:[#allocation23_spill] sm:$0xff] %v2040_v22  ;;  %v2048_v28 = vsub.f32 %v2931_v47, %v1867_v17  ;;  %v2933_v47 = vld [vmem:[#allocation27_spill] sm:$0xff] }
 0x196   :  { %v735_v39 = vadd.f32 %v734_v19, %v672_v10  ;;  %v764_v2 = vadd.f32 %v763_v59, %v696_v41  ;;  %v675_v10 = vmul.f32 %v1808_v13, %v1808_v13  ;;  %v699_v41 = vmul.f32 %v2024_v20, %v2024_v20 }
 0x197   :  { %v2056_v20 = vsub.f32 %v2932_v49, %v1867_v17  ;;  %v2934_v49 = vld [vmem:[#allocation28_spill] sm:$0xff] }
 0x198   :  { %v736_v53 = vadd.f32 %v735_v39, %v673_v5  ;;  %v765_v16 = vadd.f32 %v764_v2, %v697_v44  ;;  %v676_v5 = vmul.f32 %v1811_v21, %v1811_v21  ;;  %v700_v44 = vmul.f32 %v2032_v27, %v2032_v27 }
 0x199   :  { %v2064_v27 = vsub.f32 %v2933_v47, %v1867_v17 }
 0x19a   :  { %v737_v19 = vadd.f32 %v736_v53, %v674_v63  ;;  %v766_v59 = vadd.f32 %v765_v16, %v698_v61  ;;  %v677_v63 = vmul.f32 %v1814_v26, %v1814_v26  ;;  %v701_v61 = vmul.f32 %v2040_v22, %v2040_v22 }
 0x19b   :  { %v2072_v22 = vsub.f32 %v2934_v49, %v1867_v17  ;;  %v704_v47 = vmul.f32 %v2064_v27, %v2064_v27  ;;  %v683_v49 = vmul.f32 %v1830_v18, %v1830_v18 }
 0x19c   :  { %v738_v39 = vadd.f32 %v737_v19, %v675_v10  ;;  %v767_v2 = vadd.f32 %v766_v59, %v699_v41  ;;  %v678_v10 = vmul.f32 %v1817_v38, %v1817_v38  ;;  %v702_v41 = vmul.f32 %v2048_v28, %v2048_v28 }
 0x19d   :  { %v705_v17 = vmul.f32 %v2072_v22, %v2072_v22 }
 0x19e   :  { %v739_v53 = vadd.f32 %v738_v39, %v676_v5  ;;  %v768_v16 = vadd.f32 %v767_v2, %v700_v44  ;;  %v679_v5 = vmul.f32 %v1820_v46, %v1820_v46  ;;  %v703_v44 = vmul.f32 %v2056_v20, %v2056_v20 }
 0x1a0   :  { %v740_v19 = vadd.f32 %v739_v53, %v677_v63  ;;  %v769_v59 = vadd.f32 %v768_v16, %v701_v61  ;;  %v680_v63 = vmul.f32 %v1823_v58, %v1823_v58  ;;  %v682_v16 = vmul.f32 %v1828_v12, %v1828_v12 }
 0x1a2   :  { %v741_v39 = vadd.f32 %v740_v19, %v678_v10  ;;  %v770_v2 = vadd.f32 %v769_v59, %v702_v41  ;;  %v681_v10 = vmul.f32 %v1826_v0, %v1826_v0  ;;  %v706_v59 = vmul.f32 %v1882_v34, %v1882_v34 }
 0x1a4   :  { %v742_v53 = vadd.f32 %v741_v39, %v679_v5  ;;  %v771_v61 = vadd.f32 %v770_v2, %v703_v44  ;;  %v707_v2 = vmul.f32 %v1886_v14, %v1886_v14 }
 0x1a6   :  { %v743_v19 = vadd.f32 %v742_v53, %v680_v63  ;;  %v772_v39 = vadd.f32 %v771_v61, %v704_v47  ;;  %v684_v53 = vmul.f32 %v1832_v35, %v1832_v35  ;;  %v708_v61 = vmul.f32 %v1890_v1, %v1890_v1 }
 0x1a8   :  { %v744_v5 = vadd.f32 %v743_v19, %v681_v10  ;;  %v773_v63 = vadd.f32 %v772_v39, %v705_v17  ;;  %v685_v19 = vmul.f32 %v1834_v45, %v1834_v45  ;;  %v709_v39 = vmul.f32 %v1894_v11, %v1894_v11 }
 0x1aa   :  { %v745_v41 = vadd.f32 %v744_v5, %v682_v16  ;;  %v774_v10 = vadd.f32 %v773_v63, %v706_v59  ;;  %v686_v5 = vmul.f32 %v1836_v4, %v1836_v4  ;;  %v710_v63 = vmul.f32 %v1898_v7, %v1898_v7 }
 0x1ac   :  { %v746_v44 = vadd.f32 %v745_v41, %v683_v49  ;;  %v775_v16 = vadd.f32 %v774_v10, %v707_v2  ;;  %v687_v41 = vmul.f32 %v1838_v8, %v1838_v8  ;;  %v711_v2 = vmul.f32 %v1902_v37, %v1902_v37 }
 0x1ae   :  { %v747_v47 = vadd.f32 %v746_v44, %v684_v53  ;;  %v776_v49 = vadd.f32 %v775_v16, %v708_v61  ;;  %v713_v61 = vmul.f32 %v1910_v6, %v1910_v6 }
 0x1b0   :  { %v748_v17 = vadd.f32 %v747_v47, %v685_v19  ;;  %v777_v53 = vadd.f32 %v776_v49, %v709_v39  ;;  %v712_v19 = vmul.f32 %v1906_v48, %v1906_v48 }
 0x1b2   :  { %v749_v59 = vadd.f32 %v748_v17, %v686_v5  ;;  %v778_v10 = vadd.f32 %v777_v53, %v710_v63  ;;  %v714_v17 = vmul.f32 %v1914_v57, %v1914_v57  ;;  %v716_v53 = vmul.f32 %v1922_v52, %v1922_v52 }
 0x1b4   :  { %v750_v44 = vadd.f32 %v749_v59, %v687_v41  ;;  %v779_v47 = vadd.f32 %v778_v10, %v711_v2  ;;  %v715_v41 = vmul.f32 %v1918_v36, %v1918_v36 }
 0x1b6   :  { %v751_v1 = vrot.slane %v750_v44, 4  ;;  %v780_v16 = vadd.f32 %v779_v47, %v712_v19  ;;  %v718_v47 = vmul.f32 %v1930_v62, %v1930_v62 }
 0x1b8   :  { %v752_v11 = vadd.f32 %v751_v1, %v750_v44  ;;  %v781_v39 = vadd.f32 %v780_v16, %v713_v61  ;;  %v717_v44 = vmul.f32 %v1926_v15, %v1926_v15  ;;  %v719_v16 = vmul.f32 %v1934_v55, %v1934_v55 }
 0x1ba   :  { %v753_v5 = vrot.slane %v752_v11, 2  ;;  %v782_v59 = vadd.f32 %v781_v39, %v714_v17 }
 0x1bc   :  { %v754_v49 = vadd.f32 %v753_v5, %v752_v11  ;;  %v783_v2 = vadd.f32 %v782_v59, %v715_v41 }
 0x1be   :  { %v755_v63 = vrot.slane %v754_v49, 1  ;;  %v784_v10 = vadd.f32 %v783_v2, %v716_v53 }
 0x1c0   :  { %v756_v1 = vadd.f32 %v755_v63, %v754_v49  ;;  %v785_v61 = vadd.f32 %v784_v10, %v717_v44 }
 0x1c2   :  { %v794_v19 = vmul.f32 0.00390625, %v756_v1  ;;  %v786_v5 = vadd.f32 %v785_v61, %v718_v47 }
 0x1c4   :  { %v796_v11 = vadd.f32 1e-05, %v794_v19  ;;  %v787_v17 = vadd.f32 %v786_v5, %v719_v16 }
 0x1c6   :  { %1400 = vrsqrt.f32 %v796_v11  ;;  %v788_v39 = vrot.slane %v787_v17, 4 }
 0x1c8   :  { %v789_v52 = vadd.f32 %v788_v39, %v787_v17 }
 0x1ca   :  { %v790_v41 = vrot.slane %v789_v52, 2 }
 0x1cc   :  { %v791_v63 = vadd.f32 %v790_v41, %v789_v52 }
 0x1ce   :  { %v792_v1 = vrot.slane %v791_v63, 1 }
 0x1d0   :  { %v2122_v49 = vpop.eup %1400  ;;  %v793_v44 = vadd.f32 %v792_v1, %v791_v63 }
 0x1d1   :  { %v830_v59 = vmul.f32 %v2122_v49, %v1836_v4  ;;  %v800_v19 = vmul.f32 %v2122_v49, %v1841_v33  ;;  %v801_v61 = vmul.f32 %v2122_v49, %v1844_v50  ;;  %v802_v11 = vmul.f32 %v2122_v49, %v1847_v25 }
 0x1d2   :  { %v795_v10 = vmul.f32 0.00390625, %v793_v44  ;;  %v803_v4 = vmul.f32 %v2122_v49, %v1854_v43  ;;  %v804_v52 = vmul.f32 %v2122_v49, %v1857_v31  ;;  %v805_v16 = vmul.f32 %v2122_v49, %v1860_v29 }
 0x1d3   :  { %vm894_vm0 = vcmp.ge.f32.partialorder %v830_v59, 0.0  ;;  %v958_v53 = vmul.f32 0.2, %v830_v59  ;;  %vm864_vm1 = vcmp.ge.f32.partialorder %v800_v19, 0.0  ;;  %vm865_vm2 = vcmp.ge.f32.partialorder %v801_v61, 0.0 }
 0x1d4   :  { %v797_v47 = vadd.f32 1e-05, %v795_v10  ;;  %v928_v33 = vmul.f32 0.2, %v800_v19  ;;  %v929_v5 = vmul.f32 0.2, %v801_v61  ;;  %v2140_v25 = vmul.f32 %v2122_v49, %v1865_v3 }
 0x1d5   :  { %v1022_v2 = vsel %vm894_vm0, %v830_v59, %v958_v53  ;;  %vm866_vm3 = vcmp.ge.f32.partialorder %v802_v11, 0.0  ;;  %v930_v17 = vmul.f32 0.2, %v802_v11  ;;  %v931_v50 = vmul.f32 0.2, %v803_v4 }
 0x1d6   :  { %1086 = vst [vmem:[#allocation7 + $0xf0] sm:$0xff] %v1022_v2  ;;  %1402 = vrsqrt.f32 %v797_v47  ;;  %vm867_vm4 = vcmp.ge.f32.partialorder %v803_v4, 0.0  ;;  %v932_v43 = vmul.f32 0.2, %v804_v52  ;;  %v992_v39 = vsel %vm864_vm1, %v800_v19, %v928_v33 }
 0x1d7   :  { %v2144_v31 = vmul.f32 %v2122_v49, %v1872_v60  ;;  %vm868_vm5 = vcmp.ge.f32.partialorder %v804_v52, 0.0  ;;  %v933_v29 = vmul.f32 0.2, %v805_v16  ;;  %v993_v41 = vsel %vm865_vm2, %v801_v61, %v929_v5  ;;  %1056 = vst [vmem:[#allocation7] sm:$0xff] %v992_v39  ;;  %v2935_v60 = vld [vmem:[#allocation31_spill] sm:$0xff] }
 0x1d8   :  { %v2148_v59 = vmul.f32 %v2122_v49, %v1775_v56  ;;  %v2152_v63 = vmul.f32 %v2122_v49, %v1778_v24  ;;  %vm869_vm6 = vcmp.ge.f32.partialorder %v805_v16, 0.0  ;;  %v994_v3 = vsel %vm866_vm3, %v802_v11, %v930_v17  ;;  %1057 = vst [vmem:[#allocation7 + $0x8] sm:$0xff] %v993_v41 }
 0x1d9   :  { %v2156_v53 = vmul.f32 %v2122_v49, %v1781_v23  ;;  %v2160_v2 = vmul.f32 %v2122_v49, %v2935_v60  ;;  %v2164_v1 = vmul.f32 %v2122_v49, %v1787_v40  ;;  %v995_v56 = vsel %vm867_vm4, %v803_v4, %v931_v50  ;;  %1058 = vst [vmem:[#allocation7 + $0x10] sm:$0xff] %v994_v3  ;;  %v2943_v3 = vld [vmem:[#allocation30_spill] sm:$0xff] }
 0x1da   :  { %v2169_v24 = vmul.f32 %v2122_v49, %v1790_v30  ;;  %v2173_v44 = vmul.f32 %v2122_v49, %v1793_v32  ;;  %v2177_v23 = vmul.f32 %v2122_v49, %v1796_v42  ;;  %v996_v10 = vsel %vm868_vm5, %v804_v52, %v932_v43  ;;  %1059 = vst [vmem:[#allocation7 + $0x18] sm:$0xff] %v995_v56 }
 0x1db   :  { %v2184_v19 = vmul.f32 %v2122_v49, %v1799_v51  ;;  %v2188_v30 = vmul.f32 %v2122_v49, %v1802_v54  ;;  %v2192_v32 = vmul.f32 %v2122_v49, %v1805_v9  ;;  %v997_v42 = vsel %vm869_vm6, %v805_v16, %v933_v29  ;;  %1060 = vst [vmem:[#allocation7 + $0x20] sm:$0xff] %v996_v10  ;;  %v2947_v10 = vld [vmem:[#allocation12_spill] sm:$0xff] }
 0x1dc   :  { %v2197_v47 = vmul.f32 %v2122_v49, %v1808_v13  ;;  %v2201_v61 = vmul.f32 %v2122_v49, %v1811_v21  ;;  %v2205_v51 = vmul.f32 %v2122_v49, %v1814_v26  ;;  %1061 = vst [vmem:[#allocation7 + $0x28] sm:$0xff] %v997_v42  ;;  %v2211_v9 = vmul.f32 %v2122_v49, %v1817_v38 }
 0x1dd   :  { %v2215_v13 = vmul.f32 %v2122_v49, %v1820_v46  ;;  %v2219_v21 = vmul.f32 %v2122_v49, %v1823_v58  ;;  %v2223_v26 = vmul.f32 %v2122_v49, %v1826_v0  ;;  %v2231_v38 = vmul.f32 %v2122_v49, %v1830_v18 }
 0x1de   :  { %vm870_vm8 = vcmp.ge.f32.partialorder %v2140_v25, 0.0  ;;  %vm871_vm9 = vcmp.ge.f32.partialorder %v2144_v31, 0.0  ;;  %v934_v46 = vmul.f32 0.2, %v2140_v25  ;;  %v935_v58 = vmul.f32 0.2, %v2144_v31 }
 0x1df   :  { %v2238_v4 = vmul.f32 0.2, %v2148_v59  ;;  %v2244_v18 = vmul.f32 0.2, %v2156_v53  ;;  %v2248_v52 = vmul.f32 %v2122_v49, %v1832_v35  ;;  %v2251_v16 = vmul.f32 0.2, %v2160_v2 }
 0x1e0   :  { %v2180_v40 = vpop.eup %1402  ;;  %v2254_v33 = vmul.f32 0.2, %v2164_v1  ;;  %v2257_v5 = vmul.f32 0.2, %v2169_v24  ;;  %v2261_v17 = vmul.f32 %v2122_v49, %v1834_v45  ;;  %v2264_v50 = vmul.f32 0.2, %v2173_v44 }
 0x1e1   :  { %v862_v54 = vmul.f32 %v2180_v40, %v1930_v62  ;;  %v2227_v62 = vmul.f32 %v2122_v49, %v1828_v12  ;;  %v2241_v12 = vmul.f32 0.2, %v2152_v63  ;;  %v2267_v35 = vmul.f32 0.2, %v2177_v23 }
 0x1e2   :  { %2936 = vst [vmem:[#allocation24_spill] sm:$0xff] %v2257_v5  ;;  %2937 = vst [vmem:[#allocation25_spill] sm:$0xff] %v2264_v50  ;;  %v2270_v43 = vmul.f32 0.2, %v2184_v19  ;;  %v2274_v39 = vmul.f32 %v2122_v49, %v1838_v8  ;;  %v2277_v29 = vmul.f32 0.2, %v2188_v30  ;;  %v2287_v60 = vmul.f32 %v2180_v40, %v2943_v3 }
 0x1e3   :  { %vm926_vm7 = vcmp.ge.f32.partialorder %v862_v54, 0.0  ;;  %v990_v11 = vmul.f32 0.2, %v862_v54  ;;  %2938 = vst [vmem:[#allocation26_spill] sm:$0xff] %v2267_v35  ;;  %v2280_v41 = vmul.f32 0.2, %v2192_v32  ;;  %v2301_v42 = vmul.f32 %v2180_v40, %v2947_v10 }
 0x1e4   :  { %2939 = vst [vmem:[#allocation27_spill] sm:$0xff] %v2270_v43  ;;  %2940 = vst [vmem:[#allocation28_spill] sm:$0xff] %v2277_v29  ;;  %v2283_v45 = vmul.f32 0.2, %v2197_v47  ;;  %vm872_vm10 = vcmp.ge.f32.partialorder %v2148_v59, 0.0  ;;  %vm873_vm11 = vcmp.ge.f32.partialorder %v2152_v63, 0.0 }
 0x1e5   :  { %v1054_v0 = vsel %vm926_vm7, %v862_v54, %v990_v11  ;;  %2941 = vst [vmem:[#allocation31_spill] sm:$0xff] %v2280_v41  ;;  %v2291_v56 = vmul.f32 0.2, %v2201_v61  ;;  %v2294_v8 = vmul.f32 0.2, %v2205_v51  ;;  %v2948_v54 = vld [vmem:[#allocation11_spill] sm:$0xff] }
 0x1e6   :  { %1118 = vst [vmem:[#allocation7 + $0x1f0] sm:$0xff] %v1054_v0  ;;  %2942 = vst [vmem:[#allocation34_spill] sm:$0xff] %v2283_v45  ;;  %v2297_v49 = vmul.f32 0.2, %v2211_v9  ;;  %v2305_v11 = vmul.f32 %v2180_v40, %v2948_v54  ;;  %v2949_v0 = vld [vmem:[#allocation13_spill] sm:$0xff]  ;;  %v2951_v10 = vld [vmem:[#allocation15_spill] sm:$0xff] }
 0x1e7   :  { %2944 = vst [vmem:[#allocation30_spill] sm:$0xff] %v2291_v56  ;;  %2945 = vst [vmem:[#allocation35_spill] sm:$0xff] %v2294_v8  ;;  %v2309_v3 = vmul.f32 %v2180_v40, %v2949_v0  ;;  %v998_v8 = vsel %vm870_vm8, %v2140_v25, %v934_v46  ;;  %v2950_v56 = vld [vmem:[#allocation14_spill] sm:$0xff]  ;;  %v2321_v45 = vmul.f32 %v2180_v40, %v2951_v10  ;;  %v2952_v54 = vld [vmem:[#allocation16_spill] sm:$0xff]  ;;  %vm874_vm12 = vcmp.ge.f32.partialorder %v2156_v53, 0.0 }
 0x1e8   :  { %2946 = vst [vmem:[#allocation36_spill] sm:$0xff] %v2297_v49  ;;  %v2317_v49 = vmul.f32 %v2180_v40, %v2950_v56  ;;  %v2325_v41 = vmul.f32 %v2180_v40, %v2952_v54  ;;  %v999_v0 = vsel %vm871_vm9, %v2144_v31, %v935_v58  ;;  %1062 = vst [vmem:[#allocation7 + $0x30] sm:$0xff] %v998_v8  ;;  %v2953_v25 = vld [vmem:[#allocation17_spill] sm:$0xff]  ;;  %v2954_v56 = vld [vmem:[#allocation18_spill] sm:$0xff]  ;;  %vm875_vm13 = vcmp.ge.f32.partialorder %v2160_v2, 0.0 }
 0x1e9   :  { %v2333_v46 = vmul.f32 %v2180_v40, %v2953_v25  ;;  %v2337_v29 = vmul.f32 %v2180_v40, %v2954_v56  ;;  %v2955_v10 = vld [vmem:[#allocation19_spill] sm:$0xff]  ;;  %v2956_v54 = vld [vmem:[#allocation20_spill] sm:$0xff]  ;;  %1063 = vst [vmem:[#allocation7 + $0x38] sm:$0xff] %v999_v0  ;;  %v2957_v31 = vld [vmem:[#allocation21_spill] sm:$0xff]  ;;  %vm876_vm14 = vcmp.ge.f32.partialorder %v2164_v1, 0.0  ;;  %v2367_v0 = vmul.f32 %v2180_v40, %v2056_v20 }
 0x1ea   :  { %v2341_v43 = vmul.f32 %v2180_v40, %v2955_v10  ;;  %v2345_v35 = vmul.f32 %v2180_v40, %v2956_v54  ;;  %v2350_v58 = vmul.f32 %v2180_v40, %v2957_v31  ;;  %v2958_v8 = vld [vmem:[#allocation22_spill] sm:$0xff]  ;;  %v2959_v56 = vld [vmem:[#allocation23_spill] sm:$0xff]  ;;  %v2362_v10 = vmul.f32 %v2180_v40, %v2048_v28  ;;  %v2960_v20 = vld [vmem:[#allocation32_spill] sm:$0xff] }
 0x1eb   :  { %v2354_v25 = vmul.f32 %v2180_v40, %v2958_v8  ;;  %v2358_v50 = vmul.f32 %v2180_v40, %v2959_v56  ;;  %v2371_v54 = vmul.f32 %v2180_v40, %v2064_v27  ;;  %v2375_v31 = vmul.f32 %v2180_v40, %v2072_v22  ;;  %v2961_v27 = vld [vmem:[#allocation33_spill] sm:$0xff] }
 0x1ec   :  { %v2379_v8 = vmul.f32 %v2180_v40, %v1882_v34  ;;  %vm877_vm15 = vcmp.ge.f32.partialorder %v2169_v24, 0.0  ;;  %v2384_v28 = vmul.f32 %v2180_v40, %v1886_v14  ;;  %v2388_v56 = vmul.f32 %v2180_v40, %v2960_v20 }
 0x1ed   :  { %v2392_v5 = vmul.f32 %v2180_v40, %v2961_v27  ;;  %v2396_v22 = vmul.f32 %v2180_v40, %v1898_v7  ;;  %vm878_vm0 = vcmp.ge.f32.partialorder %v2173_v44, 0.0  ;;  %v2401_v34 = vmul.f32 %v2180_v40, %v1902_v37  ;;  %v2964_v37 = vld [vmem:[#allocation29_spill] sm:$0xff] }
 0x1ee   :  { %v2405_v14 = vmul.f32 %v2180_v40, %v1906_v48  ;;  %v2409_v20 = vmul.f32 %v2180_v40, %v1910_v6  ;;  %v2413_v27 = vmul.f32 %v2180_v40, %v1914_v57  ;;  %vm879_vm1 = vcmp.ge.f32.partialorder %v2177_v23, 0.0 }
 0x1ef   :  { %2962 = vst [vmem:[#allocation12_spill] sm:$0xff] %v2401_v34  ;;  %v2418_v7 = vmul.f32 %v2180_v40, %v1918_v36  ;;  %v2422_v34 = vmul.f32 %v2180_v40, %v2964_v37  ;;  %vm880_vm2 = vcmp.ge.f32.partialorder %v2184_v19, 0.0  ;;  %v2426_v48 = vmul.f32 0.2, %v2215_v13 }
 0x1f0   :  { %2963 = vst [vmem:[#allocation11_spill] sm:$0xff] %v2409_v20  ;;  %v2429_v6 = vmul.f32 0.2, %v2219_v21  ;;  %v2433_v57 = vmul.f32 %v2180_v40, %v1926_v15  ;;  %vm881_vm3 = vcmp.ge.f32.partialorder %v2188_v30, 0.0  ;;  %v2437_v36 = vmul.f32 0.2, %v2223_v26 }
 0x1f1   :  { %2965 = vst [vmem:[#allocation13_spill] sm:$0xff] %v2422_v34  ;;  %2966 = vst [vmem:[#allocation14_spill] sm:$0xff] %v2426_v48  ;;  %v2440_v37 = vmul.f32 0.2, %v2227_v62  ;;  %v2443_v34 = vmul.f32 0.2, %v2231_v38  ;;  %v2447_v48 = vmul.f32 %v2180_v40, %v1934_v55 }
 0x1f2   :  { %2967 = vst [vmem:[#allocation15_spill] sm:$0xff] %v2433_v57  ;;  %2968 = vst [vmem:[#allocation16_spill] sm:$0xff] %v2437_v36  ;;  %vm883_vm5 = vcmp.ge.f32.partialorder %v2197_v47, 0.0  ;;  %vm884_vm6 = vcmp.ge.f32.partialorder %v2201_v61, 0.0  ;;  %v2453_v15 = vmul.f32 0.2, %v2248_v52 }
 0x1f3   :  { %2969 = vst [vmem:[#allocation17_spill] sm:$0xff] %v2440_v37  ;;  %2970 = vst [vmem:[#allocation18_spill] sm:$0xff] %v2447_v48  ;;  %v2456_v36 = vmul.f32 0.2, %v2261_v17  ;;  %v2459_v37 = vmul.f32 0.2, %v2274_v39 }
 0x1f4   :  { %2971 = vst [vmem:[#allocation19_spill] sm:$0xff] %v2453_v15  ;;  %v2466_v55 = vmul.f32 0.2, %v2287_v60  ;;  %v2469_v40 = vmul.f32 0.2, %v2301_v42  ;;  %vm889_vm8 = vcmp.ge.f32.partialorder %v2223_v26, 0.0 }
 0x1f5   :  { %2972 = vst [vmem:[#allocation20_spill] sm:$0xff] %v2459_v37  ;;  %v2472_v15 = vmul.f32 0.2, %v2305_v11  ;;  %v1000_v37 = vsel %vm872_vm10, %v2148_v59, %v2238_v4  ;;  %v1001_v59 = vsel %vm873_vm11, %v2152_v63, %v2241_v12  ;;  %vm893_vm10 = vcmp.ge.f32.partialorder %v2261_v17, 0.0 }
 0x1f6   :  { %2973 = vst [vmem:[#allocation21_spill] sm:$0xff] %v2466_v55  ;;  %2974 = vst [vmem:[#allocation22_spill] sm:$0xff] %v2469_v40  ;;  %v2483_v55 = vmul.f32 0.2, %v2309_v3  ;;  %v2486_v40 = vmul.f32 0.2, %v2317_v49  ;;  %v1002_v63 = vsel %vm874_vm12, %v2156_v53, %v2244_v18  ;;  %v1003_v53 = vsel %vm875_vm13, %v2160_v2, %v2251_v16 }
 0x1f7   :  { %2975 = vst [vmem:[#allocation23_spill] sm:$0xff] %v2472_v15  ;;  %v2489_v15 = vmul.f32 0.2, %v2321_v45  ;;  %1064 = vst [vmem:[#allocation7 + $0x40] sm:$0xff] %v1000_v37  ;;  %v2500_v4 = vmul.f32 0.2, %v2325_v41  ;;  %v1004_v2 = vsel %vm876_vm14, %v2164_v1, %v2254_v33 }
 0x1f8   :  { %2976 = vst [vmem:[#allocation32_spill] sm:$0xff] %v2486_v40  ;;  %v2503_v40 = vmul.f32 0.2, %v2333_v46  ;;  %1065 = vst [vmem:[#allocation7 + $0x48] sm:$0xff] %v1001_v59  ;;  %vm898_vm11 = vcmp.ge.f32.partialorder %v2305_v11, 0.0  ;;  %vm902_vm12 = vcmp.ge.f32.partialorder %v2325_v41, 0.0 }
 0x1f9   :  { %2977 = vst [vmem:[#allocation33_spill] sm:$0xff] %v2489_v15  ;;  %v2506_v15 = vmul.f32 0.2, %v2337_v29  ;;  %v2517_v12 = vmul.f32 0.2, %v2341_v43  ;;  %1066 = vst [vmem:[#allocation7 + $0x50] sm:$0xff] %v1002_v63 }
 0x1fa   :  { %v2520_v37 = vmul.f32 0.2, %v2345_v35  ;;  %v2534_v18 = vmul.f32 0.2, %v2354_v25  ;;  %v2537_v59 = vmul.f32 0.2, %v2358_v50 }
 0x1fb   :  { %2978 = vst [vmem:[#allocation29_spill] sm:$0xff] %v2506_v15  ;;  %v2523_v15 = vmul.f32 0.2, %v2350_v58  ;;  %1067 = vst [vmem:[#allocation7 + $0x58] sm:$0xff] %v1003_v53  ;;  %vm906_vm13 = vcmp.ge.f32.partialorder %v2345_v35, 0.0  ;;  %vm910_vm14 = vcmp.ge.f32.partialorder %v2362_v10, 0.0 }
 0x1fc   :  { %2980 = vst [vmem:[#allocation38_spill] sm:$0xff] %v2537_v59  ;;  %v2551_v16 = vmul.f32 0.2, %v2367_v0  ;;  %v2554_v63 = vmul.f32 0.2, %v2371_v54  ;;  %v2984_v59 = vld [vmem:[#allocation24_spill] sm:$0xff] }
 0x1fd   :  { %2979 = vst [vmem:[#allocation37_spill] sm:$0xff] %v2523_v15  ;;  %v2540_v15 = vmul.f32 0.2, %v2362_v10  ;;  %v1005_v1 = vsel %vm877_vm15, %v2169_v24, %v2984_v59  ;;  %1068 = vst [vmem:[#allocation7 + $0x60] sm:$0xff] %v1004_v2  ;;  %v2568_v33 = vmul.f32 0.2, %v2379_v8 }
 0x1fe   :  { %2982 = vst [vmem:[#allocation40_spill] sm:$0xff] %v2554_v63  ;;  %v2571_v53 = vmul.f32 0.2, %v2384_v28  ;;  %v2988_v63 = vld [vmem:[#allocation25_spill] sm:$0xff]  ;;  %1069 = vst [vmem:[#allocation7 + $0x68] sm:$0xff] %v1005_v1  ;;  %vm914_vm15 = vcmp.ge.f32.partialorder %v2379_v8, 0.0 }
 0x1ff   :  { %2981 = vst [vmem:[#allocation39_spill] sm:$0xff] %v2540_v15  ;;  %v2557_v15 = vmul.f32 0.2, %v2375_v31  ;;  %2985 = vst [vmem:[#allocation24_spill] sm:$0xff] %v2568_v33  ;;  %v1006_v24 = vsel %vm878_vm0, %v2173_v44, %v2988_v63  ;;  %v2585_v59 = vmul.f32 0.2, %v2392_v5 }
 0x200   :  { %2986 = vst [vmem:[#allocation42_spill] sm:$0xff] %v2571_v53  ;;  %v2588_v2 = vmul.f32 0.2, %v2396_v22  ;;  %v2992_v33 = vld [vmem:[#allocation26_spill] sm:$0xff]  ;;  %1070 = vst [vmem:[#allocation7 + $0x70] sm:$0xff] %v1006_v24  ;;  %vm918_vm0 = vcmp.ge.f32.partialorder %v2396_v22, 0.0 }
 0x201   :  { %2983 = vst [vmem:[#allocation41_spill] sm:$0xff] %v2557_v15  ;;  %v2574_v15 = vmul.f32 0.2, %v2388_v56  ;;  %v1007_v44 = vsel %vm879_vm1, %v2177_v23, %v2992_v33  ;;  %v2602_v63 = vmul.f32 0.2, %v2405_v14  ;;  %vm922_vm1 = vcmp.ge.f32.partialorder %v2413_v27, 0.0 }
 0x202   :  { %2989 = vst [vmem:[#allocation25_spill] sm:$0xff] %v2588_v2  ;;  %v2605_v1 = vmul.f32 0.2, %v2409_v20  ;;  %v2995_v2 = vld [vmem:[#allocation27_spill] sm:$0xff]  ;;  %1071 = vst [vmem:[#allocation7 + $0x78] sm:$0xff] %v1007_v44  ;;  %vm923_vm7 = vcmp.ge.f32.partialorder %v2418_v7, 0.0 }
 0x203   :  { %2987 = vst [vmem:[#allocation43_spill] sm:$0xff] %v2574_v15  ;;  %v2990_v15 = vld [vmem:[#allocation12_spill] sm:$0xff]  ;;  %v1008_v23 = vsel %vm880_vm2, %v2184_v19, %v2995_v2  ;;  %v2996_v33 = vld [vmem:[#allocation13_spill] sm:$0xff]  ;;  %v2619_v24 = vmul.f32 0.2, %v2418_v7  ;;  %vm927_vm2 = vcmp.ge.f32.partialorder %v2447_v48, 0.0 }
 0x204   :  { %v2591_v53 = vmul.f32 0.2, %v2990_v15  ;;  %2993 = vst [vmem:[#allocation26_spill] sm:$0xff] %v2605_v1  ;;  %vm924_vm9 = vcmp.ge.f32.partialorder %v2996_v33, 0.0  ;;  %v2622_v20 = vmul.f32 0.2, %v2996_v33 }
 0x205   :  { %v2999_v1 = vld [vmem:[#allocation28_spill] sm:$0xff]  ;;  %1072 = vst [vmem:[#allocation7 + $0x80] sm:$0xff] %v1008_v23  ;;  %v2633_v2 = vmul.f32 0.2, %v2447_v48  ;;  %v3000_v44 = vld [vmem:[#allocation31_spill] sm:$0xff]  ;;  %vm3001_vm4 = vcmp.ge.f32.partialorder %v2192_v32, 0.0 }
 0x206   :  { %2991 = vst [vmem:[#allocation12_spill] sm:$0xff] %v2591_v53  ;;  %v2608_v53 = vmul.f32 0.2, %v2413_v27  ;;  %2997 = vst [vmem:[#allocation27_spill] sm:$0xff] %v2622_v20  ;;  %v1009_v19 = vsel %vm881_vm3, %v2188_v30, %v2999_v1  ;;  %v1010_v33 = vsel %vm3001_vm4, %v2192_v32, %v3000_v44  ;;  %v3002_v20 = vld [vmem:[#allocation34_spill] sm:$0xff]  ;;  %v3004_v1 = vld [vmem:[#allocation35_spill] sm:$0xff] }
 0x207   :  { %1073 = vst [vmem:[#allocation7 + $0x88] sm:$0xff] %v1009_v19  ;;  %vm3005_vm3 = vcmp.ge.f32.partialorder %v2205_v51, 0.0  ;;  %v3006_v48 = vld [vmem:[#allocation36_spill] sm:$0xff]  ;;  %vm3007_vm4 = vcmp.ge.f32.partialorder %v2211_v9, 0.0  ;;  %v3008_v44 = vld [vmem:[#allocation14_spill] sm:$0xff]  ;;  %1074 = vst [vmem:[#allocation7 + $0x90] sm:$0xff] %v1010_v33 }
 0x208   :  { %2994 = vst [vmem:[#allocation44_spill] sm:$0xff] %v2608_v53  ;;  %v2625_v53 = vmul.f32 0.2, %v2433_v57  ;;  %v1011_v57 = vsel %vm883_vm5, %v2197_v47, %v3002_v20  ;;  %v1013_v23 = vsel %vm3005_vm3, %v2205_v51, %v3004_v1  ;;  %v1014_v32 = vsel %vm3007_vm4, %v2211_v9, %v3006_v48  ;;  %v3011_v20 = vld [vmem:[#allocation16_spill] sm:$0xff]  ;;  %v3015_v48 = vld [vmem:[#allocation19_spill] sm:$0xff] }
 0x209   :  { %vm3009_vm5 = vcmp.ge.f32.partialorder %v2215_v13, 0.0  ;;  %1075 = vst [vmem:[#allocation7 + $0x98] sm:$0xff] %v1011_v57  ;;  %v1017_v51 = vsel %vm889_vm8, %v2223_v26, %v3011_v20  ;;  %vm3013_vm3 = vcmp.ge.f32.partialorder %v2227_v62, 0.0  ;;  %vm3014_vm4 = vcmp.ge.f32.partialorder %v2231_v38, 0.0  ;;  %1077 = vst [vmem:[#allocation7 + $0xa8] sm:$0xff] %v1013_v23 }
 0x20a   :  { %2998 = vst [vmem:[#allocation45_spill] sm:$0xff] %v2625_v53  ;;  %v3003_v53 = vld [vmem:[#allocation30_spill] sm:$0xff]  ;;  %v1015_v47 = vsel %vm3009_vm5, %v2215_v13, %v3008_v44  ;;  %v1019_v13 = vsel %vm3014_vm4, %v2231_v38, %v2443_v34  ;;  %vm3016_vm5 = vcmp.ge.f32.partialorder %v2248_v52, 0.0  ;;  %1078 = vst [vmem:[#allocation7 + $0xb0] sm:$0xff] %v1014_v32  ;;  %v1021_v26 = vsel %vm893_vm10, %v2261_v17, %v2456_v36  ;;  %v3019_v38 = vld [vmem:[#allocation21_spill] sm:$0xff] }
 0x20b   :  { %v1012_v30 = vsel %vm884_vm6, %v2201_v61, %v3003_v53  ;;  %vm3010_vm6 = vcmp.ge.f32.partialorder %v2219_v21, 0.0  ;;  %v3012_v53 = vld [vmem:[#allocation17_spill] sm:$0xff]  ;;  %1079 = vst [vmem:[#allocation7 + $0xb8] sm:$0xff] %v1015_v47  ;;  %vm3018_vm8 = vcmp.ge.f32.partialorder %v2274_v39, 0.0  ;;  %1081 = vst [vmem:[#allocation7 + $0xc8] sm:$0xff] %v1017_v51  ;;  %v3023_v17 = vld [vmem:[#allocation23_spill] sm:$0xff] }
 0x20c   :  { %v1016_v61 = vsel %vm3010_vm6, %v2219_v21, %v2429_v6  ;;  %1076 = vst [vmem:[#allocation7 + $0xa0] sm:$0xff] %v1012_v30  ;;  %v1018_v9 = vsel %vm3013_vm3, %v2227_v62, %v3012_v53  ;;  %v1020_v21 = vsel %vm3016_vm5, %v2248_v52, %v3015_v48  ;;  %v3017_v62 = vld [vmem:[#allocation20_spill] sm:$0xff]  ;;  %vm3020_vm6 = vcmp.ge.f32.partialorder %v2287_v60, 0.0  ;;  %v3021_v52 = vld [vmem:[#allocation22_spill] sm:$0xff]  ;;  %1083 = vst [vmem:[#allocation7 + $0xd8] sm:$0xff] %v1019_v13 }
 0x20d   :  { %1080 = vst [vmem:[#allocation7 + $0xc0] sm:$0xff] %v1016_v61  ;;  %v1023_v6 = vsel %vm3018_vm8, %v2274_v39, %v3017_v62  ;;  %v1024_v34 = vsel %vm3020_vm6, %v2287_v60, %v3019_v38  ;;  %vm3022_vm3 = vcmp.ge.f32.partialorder %v2301_v42, 0.0  ;;  %1082 = vst [vmem:[#allocation7 + $0xd0] sm:$0xff] %v1018_v9  ;;  %v1026_v36 = vsel %vm898_vm11, %v2305_v11, %v3023_v17  ;;  %v3025_v60 = vld [vmem:[#allocation32_spill] sm:$0xff]  ;;  %v3047_v30 = vld [vmem:[#allocation43_spill] sm:$0xff] }
 0x20e   :  { %v1025_v57 = vsel %vm3022_vm3, %v2301_v42, %v3021_v52  ;;  %1084 = vst [vmem:[#allocation7 + $0xe0] sm:$0xff] %v1020_v21  ;;  %vm3024_vm10 = vcmp.ge.f32.partialorder %v2309_v3, 0.0  ;;  %vm3026_vm4 = vcmp.ge.f32.partialorder %v2317_v49, 0.0  ;;  %v3027_v42 = vld [vmem:[#allocation33_spill] sm:$0xff]  ;;  %vm3028_vm5 = vcmp.ge.f32.partialorder %v2321_v45, 0.0  ;;  %1085 = vst [vmem:[#allocation7 + $0xe8] sm:$0xff] %v1021_v26 }
 0x20f   :  { %v1027_v39 = vsel %vm3024_vm10, %v2309_v3, %v2483_v55  ;;  %v1028_v33 = vsel %vm3026_vm4, %v2317_v49, %v3025_v60  ;;  %v1029_v19 = vsel %vm3028_vm5, %v2321_v45, %v3027_v42  ;;  %1087 = vst [vmem:[#allocation7 + $0xf8] sm:$0xff] %v1023_v6  ;;  %1088 = vst [vmem:[#allocation7 + $0x100] sm:$0xff] %v1024_v34  ;;  %vm3029_vm11 = vcmp.ge.f32.partialorder %v2333_v46, 0.0  ;;  %v3030_v49 = vld [vmem:[#allocation29_spill] sm:$0xff]  ;;  %v3061_v51 = vld [vmem:[#allocation15_spill] sm:$0xff] }
 0x210   :  { %1089 = vst [vmem:[#allocation7 + $0x108] sm:$0xff] %v1025_v57  ;;  %v1030_v11 = vsel %vm902_vm12, %v2325_v41, %v2500_v4  ;;  %v1031_v3 = vsel %vm3029_vm11, %v2333_v46, %v2503_v40  ;;  %vm3031_vm8 = vcmp.ge.f32.partialorder %v2337_v29, 0.0  ;;  %vm3032_vm6 = vcmp.ge.f32.partialorder %v2341_v43, 0.0  ;;  %1090 = vst [vmem:[#allocation7 + $0x110] sm:$0xff] %v1026_v36  ;;  %v3033_v46 = vld [vmem:[#allocation37_spill] sm:$0xff] }
 0x211   :  { %v1032_v55 = vsel %vm3031_vm8, %v2337_v29, %v3030_v49  ;;  %v1033_v45 = vsel %vm3032_vm6, %v2341_v43, %v2517_v12  ;;  %1091 = vst [vmem:[#allocation7 + $0x118] sm:$0xff] %v1027_v39  ;;  %1092 = vst [vmem:[#allocation7 + $0x120] sm:$0xff] %v1028_v33  ;;  %v1034_v41 = vsel %vm906_vm13, %v2345_v35, %v2520_v37  ;;  %vm3034_vm12 = vcmp.ge.f32.partialorder %v2350_v58, 0.0  ;;  %v3036_v43 = vld [vmem:[#allocation38_spill] sm:$0xff]  ;;  %v3038_v35 = vld [vmem:[#allocation39_spill] sm:$0xff] }
 0x212   :  { %1093 = vst [vmem:[#allocation7 + $0x128] sm:$0xff] %v1029_v19  ;;  %v1035_v40 = vsel %vm3034_vm12, %v2350_v58, %v3033_v46  ;;  %vm3035_vm3 = vcmp.ge.f32.partialorder %v2354_v25, 0.0  ;;  %vm3037_vm10 = vcmp.ge.f32.partialorder %v2358_v50, 0.0  ;;  %1094 = vst [vmem:[#allocation7 + $0x130] sm:$0xff] %v1030_v11  ;;  %v1038_v12 = vsel %vm910_vm14, %v2362_v10, %v3038_v35  ;;  %v3044_v10 = vld [vmem:[#allocation24_spill] sm:$0xff]  ;;  %v3060_v20 = vld [vmem:[#allocation45_spill] sm:$0xff] }
 0x213   :  { %v1036_v29 = vsel %vm3035_vm3, %v2354_v25, %v2534_v18  ;;  %v1037_v4 = vsel %vm3037_vm10, %v2358_v50, %v3036_v43  ;;  %1095 = vst [vmem:[#allocation7 + $0x138] sm:$0xff] %v1031_v3  ;;  %1096 = vst [vmem:[#allocation7 + $0x140] sm:$0xff] %v1032_v55  ;;  %vm3039_vm13 = vcmp.ge.f32.partialorder %v2367_v0, 0.0  ;;  %v3040_v25 = vld [vmem:[#allocation40_spill] sm:$0xff]  ;;  %vm3041_vm4 = vcmp.ge.f32.partialorder %v2371_v54, 0.0  ;;  %v3042_v50 = vld [vmem:[#allocation41_spill] sm:$0xff] }
 0x214   :  { %1097 = vst [vmem:[#allocation7 + $0x148] sm:$0xff] %v1033_v45  ;;  %v1039_v58 = vsel %vm3039_vm13, %v2367_v0, %v2551_v16  ;;  %v1040_v37 = vsel %vm3041_vm4, %v2371_v54, %v3040_v25  ;;  %vm3043_vm5 = vcmp.ge.f32.partialorder %v2375_v31, 0.0  ;;  %1098 = vst [vmem:[#allocation7 + $0x150] sm:$0xff] %v1034_v41  ;;  %v1042_v0 = vsel %vm914_vm15, %v2379_v8, %v3044_v10  ;;  %v3045_v16 = vld [vmem:[#allocation42_spill] sm:$0xff]  ;;  %v3050_v8 = vld [vmem:[#allocation25_spill] sm:$0xff] }
 0x215   :  { %v1041_v18 = vsel %vm3043_vm5, %v2375_v31, %v3042_v50  ;;  %1099 = vst [vmem:[#allocation7 + $0x158] sm:$0xff] %v1035_v40  ;;  %1100 = vst [vmem:[#allocation7 + $0x160] sm:$0xff] %v1036_v29  ;;  %vm3046_vm14 = vcmp.ge.f32.partialorder %v2384_v28, 0.0  ;;  %vm3048_vm11 = vcmp.ge.f32.partialorder %v2388_v56, 0.0  ;;  %vm3049_vm8 = vcmp.ge.f32.partialorder %v2392_v5, 0.0 }
 0x216   :  { %1101 = vst [vmem:[#allocation7 + $0x168] sm:$0xff] %v1037_v4  ;;  %v1043_v54 = vsel %vm3046_vm14, %v2384_v28, %v3045_v16  ;;  %v1044_v31 = vsel %vm3048_vm11, %v2388_v56, %v3047_v30  ;;  %v1045_v1 = vsel %vm3049_vm8, %v2392_v5, %v2585_v59  ;;  %1102 = vst [vmem:[#allocation7 + $0x170] sm:$0xff] %v1038_v12  ;;  %v3051_v28 = vld [vmem:[#allocation12_spill] sm:$0xff]  ;;  %vm3052_vm15 = vcmp.ge.f32.partialorder %v2990_v15, 0.0  ;;  %v3054_v5 = vld [vmem:[#allocation26_spill] sm:$0xff] }
 0x217   :  { %1103 = vst [vmem:[#allocation7 + $0x178] sm:$0xff] %v1039_v58  ;;  %1104 = vst [vmem:[#allocation7 + $0x180] sm:$0xff] %v1040_v37  ;;  %v1046_v23 = vsel %vm918_vm0, %v2396_v22, %v3050_v8  ;;  %v1047_v32 = vsel %vm3052_vm15, %v2990_v15, %v3051_v28  ;;  %vm3053_vm6 = vcmp.ge.f32.partialorder %v2405_v14, 0.0  ;;  %v3055_v59 = vld [vmem:[#allocation11_spill] sm:$0xff]  ;;  %v3057_v22 = vld [vmem:[#allocation44_spill] sm:$0xff]  ;;  %v1051_v15 = vsel %vm923_vm7, %v2418_v7, %v2619_v24 }
 0x218   :  { %1105 = vst [vmem:[#allocation7 + $0x188] sm:$0xff] %v1041_v18  ;;  %v1048_v56 = vsel %vm3053_vm6, %v2405_v14, %v2602_v63  ;;  %vm3056_vm12 = vcmp.ge.f32.partialorder %v3055_v59, 0.0  ;;  %1106 = vst [vmem:[#allocation7 + $0x190] sm:$0xff] %v1042_v0  ;;  %v1050_v47 = vsel %vm922_vm1, %v2413_v27, %v3057_v22  ;;  %v3058_v14 = vld [vmem:[#allocation27_spill] sm:$0xff]  ;;  %v3059_v63 = vld [vmem:[#allocation13_spill] sm:$0xff]  ;;  %vm3062_vm0 = vcmp.ge.f32.partialorder %v3061_v51, 0.0 }
 0x219   :  { %v1049_v44 = vsel %vm3056_vm12, %v3055_v59, %v3054_v5  ;;  %1107 = vst [vmem:[#allocation7 + $0x198] sm:$0xff] %v1043_v54  ;;  %1108 = vst [vmem:[#allocation7 + $0x1a0] sm:$0xff] %v1044_v31  ;;  %v1052_v61 = vsel %vm924_vm9, %v3059_v63, %v3058_v14  ;;  %v1053_v53 = vsel %vm3062_vm0, %v3061_v51, %v3060_v20  ;;  %v3063_v27 = vld [vmem:[#allocation18_spill] sm:$0xff] }
 0x21a   :  { %1109 = vst [vmem:[#allocation7 + $0x1a8] sm:$0xff] %v1045_v1  ;;  %1110 = vst [vmem:[#allocation7 + $0x1b0] sm:$0xff] %v1046_v23  ;;  %v1055_v7 = vsel %vm927_vm2, %v3063_v27, %v2633_v2 }
 0x21b   :  { %1111 = vst [vmem:[#allocation7 + $0x1b8] sm:$0xff] %v1047_v32  ;;  %1112 = vst [vmem:[#allocation7 + $0x1c0] sm:$0xff] %v1048_v56 }
 0x21c   :  { %1113 = vst [vmem:[#allocation7 + $0x1c8] sm:$0xff] %v1049_v44  ;;  %1114 = vst [vmem:[#allocation7 + $0x1d0] sm:$0xff] %v1050_v47 }
 0x21d   :  { %1115 = vst [vmem:[#allocation7 + $0x1d8] sm:$0xff] %v1051_v15  ;;  %1116 = vst [vmem:[#allocation7 + $0x1e0] sm:$0xff] %v1052_v61 }
 0x21e   :  { %1117 = vst [vmem:[#allocation7 + $0x1e8] sm:$0xff] %v1053_v53  ;;  %1119 = vst [vmem:[#allocation7 + $0x1f8] sm:$0xff] %v1055_v7 }
 0x21f   :  { %1459 = shalt.err (!%p1456_p6)
}
 0x220   :  { %s1460_s15 = scalar_lea.hbm %s2829_s3, 8192 }
 0x221   :  { %p1461_p7 = scmp.ne.s32.totalorder %s2829_s3, %s1460_s15  ;;  %p1464_p8 = scmp.lt.u32.totalorder %s1460_s15, %s2829_s3 }
 0x223   :  { %p1466_p9 = pnand %p1464_p8, %p1461_p7 }
 0x225   :  { %1469 = shalt.err (!%p1466_p9)
}
 0x226   :  { %1131 = dma.vmem_to_hbm [thread:$0]  %s1126_s11, 8192, %s2829_s3, [#allocation4], %s1477_s22, %s1477_s22, %s1478_s23  }
 0x227   :  { %1474 = dma.done.wait [#allocation4], 8192  }
 0x228   :  { %1475 = vsyncadd [#allocation4], 4294959104 }
 0x229   :  { %1135 = vsyncpa [#allocation3], 1 }
 0x22a   :  { %1136 = vsyncpa [#allocation6], 1 }
 0x22b   :  { %1137 = vsyncpa [#allocation4], 1 }

</bundles_post_ra>
